<compile_context>
chip_gen: v7x
topology: tpu7x:2x2x1
jax: 0.10.0
libtpu: 0.0.40
codegen_flags: <defaults>
</compile_context>

<pallas_src>
import functools

import jax
import jax.numpy as jnp
from jax.experimental import pallas as pl
from jax.experimental.pallas import tpu as pltpu

IMAGE_CHANNELS = 159
CODEBOOK_WEIGHT = 1.0

# Streaming tile caps: 2 inputs x 2 pipeline buffers x (256*2048*4 B) = 8 MiB.
_TR_MAX = 256     # sublane (row) tile, multiple of 8
_TC_MAX = 2048    # lane (col) tile, multiple of 128


def _make_pos_weight(image_channels: int = IMAGE_CHANNELS) -> jnp.ndarray:
    # torch.ones(image_channels).index_fill_(0, torch.arange(153, 158), 20)
    w = jnp.ones((image_channels,), dtype=jnp.float32)
    w = w.at[jnp.arange(153, 158)].set(20.0)
    return w


def _round_up(x: int, m: int) -> int:
    return (x + m - 1) // m * m


def _pick_tile(extent: int, align: int, cap: int) -> int:
    if extent % align == 0:
        return min(cap, extent)
    if extent < align:
        return extent                      # full-extent block is always legal
    return min(cap, _round_up(extent, align))


def _bce_partial_kernel(pred_ref, targ_ref, w_ref, out_ref, *,
                        rows: int, cols: int, tr: int, tc: int,
                        mask_rows: bool, mask_cols: bool):
    """Accumulate per-row partial sums of the weighted BCE-with-logits loss."""
    i = pl.program_id(0)   # row-block index ("parallel")
    j = pl.program_id(1)   # col-block index ("arbitrary" reduction)

    @pl.when(j == 0)
    def _():
        out_ref[...] = jnp.zeros_like(out_ref)

    x = pred_ref[...].astype(jnp.float32)          # (tr, tc) logits
    y = targ_ref[...].astype(jnp.float32)          # (tr, tc) targets
    w = w_ref[...].astype(jnp.float32)             # (tr, 1) pos_weight per row

    # PyTorch's numerically-stable binary_cross_entropy_with_logits w/ pos_weight:
    #   log_weight = 1 + (pos_weight - 1) * y
    #   loss = (1 - y) * x + log_weight * (log1p(exp(-|x|)) + max(-x, 0))
    log_weight = 1.0 + (w - 1.0) * y
    elem = (1.0 - y) * x + log_weight * (
        jnp.log1p(jnp.exp(-jnp.abs(x))) + jnp.maximum(-x, 0.0)
    )

    # Mask padded edges only if the grid does not divide evenly (static check).
    if mask_rows or mask_cols:
        valid = None
        if mask_rows:
            row_ids = i * tr + jax.lax.broadcasted_iota(jnp.int32, (tr, tc), 0)
            valid = row_ids < rows
        if mask_cols:
            col_ids = j * tc + jax.lax.broadcasted_iota(jnp.int32, (tr, tc), 1)
            col_ok = col_ids < cols
            valid = col_ok if valid is None else (valid & col_ok)
        elem = jnp.where(valid, elem, 0.0)

    # (tr, 1) partial sum per row; accumulate into the resident output block.
    out_ref[...] += jnp.sum(elem, axis=1, keepdims=True)[None]


def bce_loss_with_quant(qloss, target, prediction, weight,
                        codebook_weight: float = CODEBOOK_WEIGHT):
    """qloss: scalar; target/prediction: (N, C, H, W); weight: (C,)."""
    N, C, H, W = prediction.shape
    rows, cols = N * C, H * W

    # Free metadata reshapes: NCHW is already contiguous as (N*C, H*W).
    pred2d = prediction.reshape(rows, cols)
    targ2d = target.reshape(rows, cols)
    # Tiny per-row pos_weight column (row n*C + c gets weight[c]).
    w_rows = jnp.tile(weight.astype(jnp.float32), N).reshape(rows, 1)

    tr = _pick_tile(rows, 8, _TR_MAX)
    tc = _pick_tile(cols, 128, _TC_MAX)
    grid_rows = (rows + tr - 1) // tr
    grid_cols = (cols + tc - 1) // tc

    kernel = functools.partial(
        _bce_partial_kernel,
        rows=rows, cols=cols, tr=tr, tc=tc,
        mask_rows=(grid_rows * tr != rows),
        mask_cols=(grid_cols * tc != cols))

    # Advisory cost for XLA's scheduler (streaming, ~2 EUP ops / elem).
    cost = pl.CostEstimate(flops=10 * rows * cols,
                           transcendentals=2 * rows * cols,
                           bytes_accessed=2 * rows * cols * 4)

    partials = pl.pallas_call(
        kernel,
        out_shape=jax.ShapeDtypeStruct((grid_rows, tr, 1), jnp.float32),
        grid_spec=pltpu.PrefetchScalarGridSpec(
            num_scalar_prefetch=0,
            grid=(grid_rows, grid_cols),
            in_specs=[
                pl.BlockSpec((tr, tc), lambda i, j: (i, j)),   # prediction
                pl.BlockSpec((tr, tc), lambda i, j: (i, j)),   # target
                pl.BlockSpec((tr, 1), lambda i, j: (i, 0)),    # per-row pos_weight
            ],
            out_specs=pl.BlockSpec((1, tr, 1), lambda i, j: (i, 0, 0)),
        ),
        compiler_params=pltpu.CompilerParams(
            dimension_semantics=("parallel", "arbitrary")),
        cost_estimate=cost,
    )(pred2d, targ2d, w_rows)

    # Scalar epilogue: mean over N*C*H*W elements + codebook term.
    # (Padded rows in the last row block contribute exactly 0.)
    n_elems = jnp.float32(rows * cols)
    bce = jnp.sum(partials) / n_elems
    return bce + jnp.float32(codebook_weight) * jnp.asarray(qloss, jnp.float32)


def _reference(qloss, target, prediction, weight, codebook_weight=CODEBOOK_WEIGHT):
    # Pure-JAX reference of F.binary_cross_entropy_with_logits(..., pos_weight=weight)
    x = jnp.transpose(prediction, (0, 2, 3, 1)).astype(jnp.float32)
    y = jnp.transpose(target, (0, 2, 3, 1)).astype(jnp.float32)
    w = weight.astype(jnp.float32)
    log_weight = 1.0 + (w - 1.0) * y
    elem = (1.0 - y) * x + log_weight * (
        jnp.log1p(jnp.exp(-jnp.abs(x))) + jnp.maximum(-x, 0.0)
    )
    return jnp.mean(elem) + codebook_weight * qloss


if __name__ == "__main__":
    key = jax.random.PRNGKey(0)
    weight = _make_pos_weight(IMAGE_CHANNELS)

    # (8x8) exercises the lane-edge (H*W < 128) full-extent block path;
    # (32x32) exercises multi row-block grid + row-edge mask (N*C = 318);
    # (16x16) divides the lane tile exactly (no masking compiled in).
    for (N, C, H, W) in [(2, IMAGE_CHANNELS, 8, 8),
                         (2, IMAGE_CHANNELS, 32, 32),
                         (2, IMAGE_CHANNELS, 16, 16)]:
        k1, k2, k3, key = jax.random.split(key, 4)
        prediction = jax.random.normal(k1, (N, C, H, W), dtype=jnp.float32)
        target = (jax.random.uniform(k2, (N, C, H, W)) > 0.5).astype(jnp.float32)
        qloss = jax.random.uniform(k3, (), dtype=jnp.float32)

        loss = jax.block_until_ready(
            bce_loss_with_quant(qloss, target, prediction, weight))
        ref = jax.block_until_ready(
            _reference(qloss, target, prediction, weight))
        assert jnp.allclose(loss, ref, rtol=1e-4, atol=1e-5), (N, C, H, W, loss, ref)

    print("KERNEL_OK")
</pallas_src>

<mosaic_0001>
module attributes {stable_mosaic.version = 11 : i64} {
  func.func @_bce_partial_kernel(%arg0: i32, %arg1: i32, %arg2: memref<256x64xf32, #tpu.memory_space<vmem>>, %arg3: memref<256x64xf32, #tpu.memory_space<vmem>>, %arg4: memref<256x1xf32, #tpu.memory_space<vmem>>, %arg5: memref<1x256x1xf32, #tpu.memory_space<vmem>>) attributes {dimension_semantics = [#tpu.dimension_semantics<parallel>, #tpu.dimension_semantics<arbitrary>], iteration_bounds = array<i64: 2, 1>, scalar_prefetch = 0 : i64, scratch_operands = 0 : i64, tpu.core_type = #tpu.core_type<tc>, window_params = [{transform_indices = @transform_0, window_bounds = array<i64: 256, 64>}, {transform_indices = @transform_1, window_bounds = array<i64: 256, 64>}, {transform_indices = @transform_2, window_bounds = array<i64: 256, 1>}, {transform_indices = @transform_3, window_bounds = array<i64: 1, 256, 1>}]} {
    %c0_i32 = arith.constant 0 : i32
    %0 = arith.cmpi eq, %arg1, %c0_i32 : i32
    %1 = arith.extui %0 : i1 to i32
    %c0_i32_0 = arith.constant 0 : i32
    %2 = arith.cmpi ne, %1, %c0_i32_0 : i32
    scf.if %2 {
      %cst_19 = arith.constant 0.000000e+00 : f32
      %41 = vector.broadcast %cst_19 : f32 to vector<1x256x1xf32>
      %c0_20 = arith.constant 0 : index
      %c0_21 = arith.constant 0 : index
      %c0_22 = arith.constant 0 : index
      %42 = vector.load %arg5[%c0_20, %c0_21, %c0_22] : memref<1x256x1xf32, #tpu.memory_space<vmem>>, vector<1x256x1xf32>
      tpu.vector_store %arg5[%c0_20, %c0_21, %c0_22], %41 {strides = array<i32>} : memref<1x256x1xf32, #tpu.memory_space<vmem>>, vector<1x256x1xf32>,
    } else {
    }
    %c0 = arith.constant 0 : index
    %c0_1 = arith.constant 0 : index
    %3 = vector.load %arg2[%c0, %c0_1] : memref<256x64xf32, #tpu.memory_space<vmem>>, vector<256x64xf32>
    %c0_2 = arith.constant 0 : index
    %c0_3 = arith.constant 0 : index
    %4 = vector.load %arg3[%c0_2, %c0_3] : memref<256x64xf32, #tpu.memory_space<vmem>>, vector<256x64xf32>
    %c0_4 = arith.constant 0 : index
    %c0_5 = arith.constant 0 : index
    %5 = vector.load %arg4[%c0_4, %c0_5] : memref<256x1xf32, #tpu.memory_space<vmem>>, vector<256x1xf32>
    %cst = arith.constant 1.000000e+00 : f32
    %6 = vector.broadcast %cst : f32 to vector<256x1xf32>
    %7 = arith.subf %5, %6 : vector<256x1xf32>
    %8 = vector.broadcast %7 : vector<256x1xf32> to vector<256x64xf32>
    %9 = arith.mulf %8, %4 : vector<256x64xf32>
    %cst_6 = arith.constant 1.000000e+00 : f32
    %10 = vector.broadcast %cst_6 : f32 to vector<256x64xf32>
    %11 = arith.addf %10, %9 : vector<256x64xf32>
    %cst_7 = arith.constant 1.000000e+00 : f32
    %12 = vector.broadcast %cst_7 : f32 to vector<256x64xf32>
    %13 = arith.subf %12, %4 : vector<256x64xf32>
    %14 = arith.mulf %13, %3 : vector<256x64xf32>
    %15 = math.absf %3 : vector<256x64xf32>
    %cst_8 = arith.constant 0.000000e+00 : f32
    %16 = vector.broadcast %cst_8 : f32 to vector<256x64xf32>
    %17 = arith.subf %16, %15 : vector<256x64xf32>
    %18 = math.exp %17 : vector<256x64xf32>
    %19 = math.log1p %18 : vector<256x64xf32>
    %cst_9 = arith.constant 0.000000e+00 : f32
    %20 = vector.broadcast %cst_9 : f32 to vector<256x64xf32>
    %21 = arith.subf %20, %3 : vector<256x64xf32>
    %cst_10 = arith.constant 0.000000e+00 : f32
    %22 = vector.broadcast %cst_10 : f32 to vector<256x64xf32>
    %23 = arith.maximumf %21, %22 : vector<256x64xf32>
    %24 = arith.addf %19, %23 : vector<256x64xf32>
    %25 = arith.mulf %11, %24 : vector<256x64xf32>
    %26 = arith.addf %14, %25 : vector<256x64xf32>
    %c256_i32 = arith.constant 256 : i32
    %27 = arith.muli %arg0, %c256_i32 : i32
    %28 = tpu.iota {dimensions = array<i32: 0>} : vector<256x64xi32>
    %29 = vector.broadcast %27 : i32 to vector<256x64xi32>
    %30 = arith.addi %29, %28 : vector<256x64xi32>
    %c318_i32 = arith.constant 318 : i32
    %31 = vector.broadcast %c318_i32 : i32 to vector<256x64xi32>
    %32 = arith.cmpi slt, %30, %31 : vector<256x64xi32>
    %cst_11 = arith.constant 0.000000e+00 : f32
    %33 = vector.broadcast %cst_11 : f32 to vector<256x64xf32>
    %34 = arith.select %32, %26, %33 : vector<256x64xi1>, vector<256x64xf32>
    %c0_12 = arith.constant 0 : index
    %c0_13 = arith.constant 0 : index
    %c0_14 = arith.constant 0 : index
    %35 = vector.load %arg5[%c0_12, %c0_13, %c0_14] : memref<1x256x1xf32, #tpu.memory_space<vmem>>, vector<1x256x1xf32>
    %cst_15 = arith.constant dense<0.000000e+00> : vector<256xf32>
    %36 = vector.multi_reduction <add>, %34, %cst_15 [1] : vector<256x64xf32> to vector<256xf32>
    %37 = vector.shape_cast %36 : vector<256xf32> to vector<256x1xf32>
    %38 = vector.shape_cast %37 : vector<256x1xf32> to vector<1x256x1xf32>
    %39 = arith.addf %35, %38 : vector<1x256x1xf32>
    %c0_16 = arith.constant 0 : index
    %c0_17 = arith.constant 0 : index
    %c0_18 = arith.constant 0 : index
    %40 = vector.load %arg5[%c0_16, %c0_17, %c0_18] : memref<1x256x1xf32, #tpu.memory_space<vmem>>, vector<1x256x1xf32>
    tpu.vector_store %arg5[%c0_16, %c0_17, %c0_18], %39 {strides = array<i32>} : memref<1x256x1xf32, #tpu.memory_space<vmem>>, vector<1x256x1xf32>,
    return
  }
  func.func @transform_0(%arg0: i32, %arg1: i32) -> (i32, i32) {
    %c0_i32 = arith.constant 0 : i32
    return %arg0, %arg1 : i32, i32
  }
  func.func @transform_1(%arg0: i32, %arg1: i32) -> (i32, i32) {
    %c0_i32 = arith.constant 0 : i32
    return %arg0, %arg1 : i32, i32
  }
  func.func @transform_2(%arg0: i32, %arg1: i32) -> (i32, i32) {
    %c0_i32 = arith.constant 0 : i32
    %c0_i32_0 = arith.constant 0 : i32
    return %arg0, %c0_i32 : i32, i32
  }
  func.func @transform_3(%arg0: i32, %arg1: i32) -> (i32, i32, i32) {
    %c0_i32 = arith.constant 0 : i32
    %c0_i32_0 = arith.constant 0 : i32
    %c0_i32_1 = arith.constant 0 : i32
    return %arg0, %c0_i32, %c0_i32_0 : i32, i32, i32
  }
}

</mosaic_0001>

<bundles_post_ra>
// kernel: tpu_custom_call.1
= control target key start
LH: loop header
LB: loop body
LE: loop exit
PB: predicated region body
PF: predicated region fallthrough
CT: control target
= control target key end

     0   :  { %s2016_s12 = smov 0   ;;  %s2018_s13 = smov 0   ;;  %s3462_s0 = inlined_call_operand.vmem [shape: f32[318,64], index: 0, kind: input, shape index: {}]   ;;  %s3463_s1 = inlined_call_operand.vmem [shape: f32[318,64], index: 1, kind: input, shape index: {}]   ;;  %s3464_s2 = inlined_call_operand.vmem [shape: f32[318,1], index: 2, kind: input, shape index: {}]   ;;  %s3465_s3 = inlined_call_operand.vmem [shape: f32[2,256,1], index: 3, kind: output, shape index: {}]  }
   0x1   :  { %s2020_s14 = smov 0  }
   0x2 LB: > { %s25_s15 = sadd.s32 1, %s1988_s13  ;;  %p1762_p0 = scmp.ge.s32.totalorder %s1992_s14, 1  ;;  %s1992_s14 = sphi %s2020_s14, %s13_s14   ;;  %s1988_s13 = sphi %s2018_s13, %s3654_s13   ;;  %s1984_s12 = sphi %s2016_s12, %s3653_s12  }
   0x3   : > { %p27_p1 = scmp.ge.s32.totalorder %s25_s15, 2  ;;  %p206_p2 = scmp.lt.s32.totalorder %s1992_s14, 3 }
   0x5   : > { %s3656_s15 = smov (%p27_p1, %s25_s15), 0  ;;  %p207_p3 = pnand %p1762_p0, %p206_p2 }
   0x7   : > { %210 = sbr.rel (%p207_p3) target bundleno = 413 (0x19d), region = 32 }
   0xe   : > { %s1763_s16 = sshll.u32 %s1984_s12, 5  ;;  %v1994_v0 = vmov 0   ;;  %s1803_s27 = sshll.u32 %s1984_s12, 8 }
   0xf   : > { %1834 = vset.pattern.permute.xlu1 %v1994_v0  ;;  %1833 = vset.pattern.permute.xlu0 %v1994_v0  ;;  %p263_p4 = scmp.lt.s32.totalorder %s1763_s16, 39  ;;  %p306_p5 = scmp.lt.s32.totalorder %s1984_s12, 1 }
  0x11   : > { %s3658_s16 = smov (!%p263_p4, %s1763_s16), 39  ;;  %s3660_s12 = smov (!%p306_p5, %s1984_s12), 1 }
  0x12   : > { %s2037_s17 = sshll.u32 %s3658_s16, 3  ;;  %s1806_s28 = sshll.u32 %s3660_s12, 8 }
  0x13   : > { %s2043_s20 = scalar_lea.vmem %s3464_s2, %s2037_s17  ;;  %s2057_s23 = scalar_lea.vmem %s3462_s0, %s2037_s17 }
  0x14   : > { %v414_v1 = vld [vmem:[%s2043_s20 + $0x10] sm:$0xff]  ;;  %v412_v2 = vld [vmem:[%s2043_s20] sm:$0xff]  ;;  %v415_v3 = vld [vmem:[%s2043_s20 + $0x18] sm:$0xff]  ;;  %s2132_s26 = scalar_lea.vmem %s3463_s1, %s2037_s17  ;;  %s3253_s4 = scalar_lea.vmem %s3465_s3, %s1806_s28 }
  0x15   : > { %v1773_v4 = vadd.f32 -1.0, %v414_v1  ;;  %v1771_v5 = vadd.f32 -1.0, %v412_v2  ;;  %v413_v6 = vld [vmem:[%s2043_s20 + $0x8] sm:$0xff]  ;;  %v1774_v7 = vadd.f32 -1.0, %v415_v3  ;;  %v416_v10 = vld [vmem:[%s2043_s20 + $0x20] sm:$0xff]  ;;  %v419_v13 = vld [vmem:[%s2043_s20 + $0x38] sm:$0xff] }
  0x16   : > { %v1772_v8 = vadd.f32 -1.0, %v413_v6  ;;  %v417_v9 = vld [vmem:[%s2043_s20 + $0x28] sm:$0xff]  ;;  %v1775_v12 = vadd.f32 -1.0, %v416_v10  ;;  %v418_v14 = vld [vmem:[%s2043_s20 + $0x30] sm:$0xff]  ;;  %v1778_v16 = vadd.f32 -1.0, %v419_v13  ;;  %v420_v19 = vld [vmem:[%s2043_s20 + $0x40] sm:$0xff] }
  0x17   : > { %488 = vperm.xlu1 %1834, %v1773_v4   ;;  %478 = vperm.xlu0 %1833, %v1771_v5   ;;  %v1776_v11 = vadd.f32 -1.0, %v417_v9  ;;  %v2060_v15 = vld [vmem:[%s2057_s23 + $0x10] sm:$0xff]  ;;  %v1777_v17 = vadd.f32 -1.0, %v418_v14  ;;  %v421_v18 = vld [vmem:[%s2043_s20 + $0x48] sm:$0xff]  ;;  %v2066_v21 = vld [vmem:[%s2057_s23] sm:$0xff]  ;;  %v1779_v25 = vadd.f32 -1.0, %v420_v19 }
  0x18   : > { %v766_v20 = vand.u32 2147483647, %v2060_v15  ;;  %v2069_v22 = vld [vmem:[%s2057_s23 + $0x18] sm:$0xff]  ;;  %v2072_v23 = vld [vmem:[%s2057_s23 + $0x8] sm:$0xff]  ;;  %v1780_v24 = vadd.f32 -1.0, %v421_v18  ;;  %v422_v27 = vld [vmem:[%s2043_s20 + $0x50] sm:$0xff] }
  0x19   : > { %v423_v26 = vld [vmem:[%s2043_s20 + $0x58] sm:$0xff]  ;;  %v764_v28 = vand.u32 2147483647, %v2066_v21  ;;  %v767_v30 = vand.u32 2147483647, %v2069_v22  ;;  %v2079_v31 = vld [vmem:[%s2057_s23 + $0x28] sm:$0xff] }
  0x1a   : > { %v798_v29 = vsub.f32 0.0, %v766_v20  ;;  %v765_v32 = vand.u32 2147483647, %v2072_v23  ;;  %v1782_v33 = vadd.f32 -1.0, %v423_v26  ;;  %v1781_v34 = vadd.f32 -1.0, %v422_v27  ;;  %v425_v35 = vld [vmem:[%s2043_s20 + $0x68] sm:$0xff] }
  0x1b   : > { %493 = vperm.xlu1 %1834, %v1774_v7   ;;  %483 = vperm.xlu0 %1833, %v1772_v8   ;;  %v424_v36 = vld [vmem:[%s2043_s20 + $0x60] sm:$0xff]  ;;  %v427_v37 = vld [vmem:[%s2043_s20 + $0x78] sm:$0xff]  ;;  %v426_v38 = vld [vmem:[%s2043_s20 + $0x70] sm:$0xff]  ;;  %v796_v40 = vsub.f32 0.0, %v764_v28  ;;  %v769_v41 = vand.u32 2147483647, %v2079_v31 }
  0x1c   : > { %v429_v39 = vld [vmem:[%s2043_s20 + $0x88] sm:$0xff]  ;;  %v428_v42 = vld [vmem:[%s2043_s20 + $0x80] sm:$0xff]  ;;  %v832_v43 = vmul.f32 1.442695, %v798_v29  ;;  %v799_v44 = vsub.f32 0.0, %v767_v30  ;;  %v1784_v46 = vadd.f32 -1.0, %v425_v35 }
  0x1d   : > { %v2090_v45 = vld [vmem:[%s2057_s23 + $0x20] sm:$0xff]  ;;  %v1783_v47 = vadd.f32 -1.0, %v424_v36  ;;  %v431_v48 = vld [vmem:[%s2043_s20 + $0x98] sm:$0xff]  ;;  %v430_v49 = vld [vmem:[%s2043_s20 + $0x90] sm:$0xff]  ;;  %v797_v50 = vsub.f32 0.0, %v765_v32  ;;  %v1786_v51 = vadd.f32 -1.0, %v427_v37 }
  0x1e   : > { %v1785_v52 = vadd.f32 -1.0, %v426_v38  ;;  %v2094_v53 = vadd.f32 -1.0, %v429_v39  ;;  %v433_v54 = vld [vmem:[%s2043_s20 + $0xa8] sm:$0xff]  ;;  %v801_v55 = vsub.f32 0.0, %v769_v41  ;;  %v2097_v56 = vadd.f32 -1.0, %v428_v42  ;;  %v432_v57 = vld [vmem:[%s2043_s20 + $0xa0] sm:$0xff] }
  0x1f   : > { %503 = vperm.xlu1 %1834, %v1776_v11   ;;  %498 = vperm.xlu0 %1833, %v1775_v12   ;;  %v828_v58 = vmul.f32 1.442695, %v796_v40  ;;  %v768_v59 = vand.u32 2147483647, %v2090_v45  ;;  %v2101_v60 = vadd.f32 -1.0, %v431_v48  ;;  %v2103_v61 = vadd.f32 -1.0, %v430_v49 }
  0x20   : > { %v435_v62 = vld [vmem:[%s2043_s20 + $0xb8] sm:$0xff]  ;;  %v434_v63 = vld [vmem:[%s2043_s20 + $0xb0] sm:$0xff]  ;;  %1835 = vpow2.f32 %v832_v43  ;;  %v834_v0 = vmul.f32 1.442695, %v799_v44  ;;  %v2107_v1 = vadd.f32 -1.0, %v433_v54  ;;  %v437_v2 = vld [vmem:[%s2043_s20 + $0xc8] sm:$0xff]  ;;  %v1341_v11 = vlaneseq }
  0x21   : > { %v436_v3 = vld [vmem:[%s2043_s20 + $0xc0] sm:$0xff]  ;;  %v830_v4 = vmul.f32 1.442695, %v797_v50  ;;  %v2112_v5 = vld [vmem:[%s2057_s23 + $0x38] sm:$0xff]  ;;  %v2114_v6 = vadd.f32 -1.0, %v432_v57  ;;  %v438_v8 = vld [vmem:[%s2043_s20 + $0xd0] sm:$0xff]  ;;  %1837 = vpow2.f32 %v828_v58 }
  0x22   : > { %v439_v7 = vld [vmem:[%s2043_s20 + $0xd8] sm:$0xff]  ;;  %v441_v9 = vld [vmem:[%s2043_s20 + $0xe8] sm:$0xff]  ;;  %v838_v10 = vmul.f32 1.442695, %v801_v55  ;;  %v2119_v12 = vadd.f32 -1.0, %v435_v62  ;;  %v2121_v13 = vadd.f32 -1.0, %v434_v63  ;;  %1839 = vpow2.f32 %v834_v0 }
  0x23   : > { %513 = vperm.xlu1 %1834, %v1778_v16   ;;  %508 = vperm.xlu0 %1833, %v1777_v17   ;;  %v440_v14 = vld [vmem:[%s2043_s20 + $0xe0] sm:$0xff]  ;;  %v800_v16 = vsub.f32 0.0, %v768_v59  ;;  %v2124_v17 = vadd.f32 -1.0, %v437_v2  ;;  %v2126_v18 = vadd.f32 -1.0, %v436_v3  ;;  %v771_v19 = vand.u32 2147483647, %v2112_v5 }
  0x24   : > { %v2136_v20 = vld [vmem:[%s2057_s23 + $0x30] sm:$0xff]  ;;  %v2142_v26 = vadd.f32 -1.0, %v441_v9  ;;  %1841 = vpow2.f32 %v830_v4  ;;  %v2145_v28 = vadd.f32 -1.0, %v440_v14  ;;  %v443_v29 = vld [vmem:[%s2043_s20 + $0xf8] sm:$0xff]  ;;  %v1180_v39 = vsub.f32 0.0, %v2066_v21  ;;  %v381_v41 = vld [vmem:[%s2132_s26 + $0x8] sm:$0xff] }
  0x25   : > { %v382_v27 = vld [vmem:[%s2132_s26 + $0x10] sm:$0xff]  ;;  %1843 = vpow2.f32 %v838_v10  ;;  %v383_v35 = vld [vmem:[%s2132_s26 + $0x18] sm:$0xff]  ;;  %v836_v36 = vmul.f32 1.442695, %v800_v16  ;;  %v770_v37 = vand.u32 2147483647, %v2136_v20  ;;  %v2204_v10 = vstv %s1803_s27 }
  0x26   : > { %v442_v30 = vld [vmem:[%s2043_s20 + $0xf0] sm:$0xff]  ;;  %v702_v32 = vsub.f32 1.0, %v382_v27  ;;  %v703_v40 = vsub.f32 1.0, %v383_v35  ;;  %v803_v42 = vsub.f32 0.0, %v771_v19  ;;  %v2158_v43 = vadd.f32 -1.0, %v443_v29  ;;  %v384_v63 = vld [vmem:[%s2132_s26 + $0x20] sm:$0xff] }
  0x27   : > { %523 = vperm.xlu1 %1834, %v1780_v24   ;;  %518 = vperm.xlu0 %1833, %v1779_v25   ;;  %v2138_v24 = vadd.f32 -1.0, %v439_v7  ;;  %v2140_v25 = vadd.f32 -1.0, %v438_v8  ;;  %v2160_v44 = vadd.f32 -1.0, %v442_v30  ;;  %v2172_v54 = vshrl.u32 %v1341_v11, 7  ;;  %v2197_v7 = vld [vmem:[%s2057_s23 + $0x48] sm:$0xff]  ;;  %v386_v27 = vld [vmem:[%s2132_s26 + $0x30] sm:$0xff] }
  0x28   : > { %v2166_v49 = vmul.f32 %v702_v32, %v2060_v15  ;;  %v1185_v57 = vsub.f32 0.0, %v2079_v31  ;;  %1845 = vpow2.f32 %v836_v36  ;;  %v2181_v59 = vmax.f32 %v1180_v39, 0.0 }
  0x29   : > { %v2184_v62 = vmul.f32 %v703_v40, %v2069_v22  ;;  %v704_v4 = vsub.f32 1.0, %v384_v63  ;;  %v1184_v9 = vsub.f32 0.0, %v2090_v45  ;;  %v1187_v19 = vsub.f32 0.0, %v2112_v5 }
  0x2a   : > { %v2163_v48 = vpop.eup %1835  ;;  %v2213_v16 = vmax.f32 %v1185_v57, 0.0  ;;  %v2227_v35 = vadd.s32 %v2204_v10, %v2172_v54 }
  0x2b   : > { %533 = vperm.xlu1 %1834, %v1782_v33   ;;  %528 = vperm.xlu0 %1833, %v1781_v34   ;;  %v1182_v33 = vsub.f32 0.0, %v2060_v15  ;;  %v2151_v34 = vld [vmem:[%s2132_s26] sm:$0xff]  ;;  %v802_v15 = vsub.f32 0.0, %v770_v37  ;;  %v2187_v0 = vpop.eup %1837  ;;  %v913_v36 = vmul.f32 -0.5, %v2163_v48  ;;  %v2239_v40 = vmax.f32 %v1187_v19, 0.0 }
  0x2c   : > { %v700_v38 = vsub.f32 1.0, %v2151_v34  ;;  %v2199_v8 = vpop.eup %1839  ;;  %v892_v32 = vadd.f32 1.0, %v2187_v0  ;;  %v898_v57 = vand.u32 2147483647, %v2187_v0 }
  0x2d   : > { %v2168_v50 = vmax.f32 %v1182_v33, 0.0  ;;  %v840_v29 = vmul.f32 1.442695, %v802_v15  ;;  %v706_v33 = vsub.f32 1.0, %v386_v27 }
  0x2e   : > { %v2179_v58 = vmul.f32 %v700_v38, %v2066_v21  ;;  %v387_v21 = vld [vmem:[%s2132_s26 + $0x38] sm:$0xff]  ;;  %v2206_v14 = vpop.eup %1841  ;;  %v2231_v38 = vmax.f32 %v1184_v9, 0.0  ;;  %vm2278_vm1 = vcmp.lt.f32.partialorder %v898_v57, 0.0004427343 }
  0x2f   : > { %543 = vperm.xlu1 %1834, %v1784_v46   ;;  %538 = vperm.xlu0 %1833, %v1783_v47   ;;  %v1183_v46 = vsub.f32 0.0, %v2069_v22  ;;  %v701_v47 = vsub.f32 1.0, %v381_v41  ;;  %v707_v11 = vsub.f32 1.0, %v387_v21  ;;  %v2217_v30 = vpop.eup %1843  ;;  %v901_v37 = vadd.f32 1.0, %v2206_v14 }
  0x30   : > { %v904_v63 = vmul.f32 -0.5, %v2206_v14  ;;  %v907_v19 = vand.u32 2147483647, %v2206_v14 }
  0x31   : > { %v2190_v2 = vmax.f32 %v1183_v46, 0.0  ;;  %v2193_v3 = vmul.f32 %v701_v47, %v2072_v23  ;;  %v2234_v39 = vmul.f32 %v707_v11, %v2112_v5  ;;  %v895_v46 = vmul.f32 -0.5, %v2187_v0 }
  0x32   : > { %v2246_v47 = vmul.f32 %v706_v33, %v2136_v20  ;;  %v1186_v5 = vsub.f32 0.0, %v2136_v20  ;;  %v925_v20 = vand.u32 2147483647, %v2199_v8  ;;  %vm2304_vm3 = vcmp.lt.f32.partialorder %v907_v19, 0.0004427343 }
  0x33   : > { %553 = vperm.xlu1 %1834, %v1786_v51   ;;  %548 = vperm.xlu0 %1833, %v1785_v52   ;;  %v1181_v51 = vsub.f32 0.0, %v2072_v23  ;;  %v385_v52 = vld [vmem:[%s2132_s26 + $0x28] sm:$0xff]  ;;  %3491 = vst [vmem:[#allocation3_spill] sm:$0xff] %v2234_v39  ;;  %v2329_v39 = vld [vmem:[%s2132_s26 + $0x40] sm:$0xff] }
  0x34   : > { %v705_v55 = vsub.f32 1.0, %v385_v52  ;;  %3492 = vst [vmem:[#allocation4_spill] sm:$0xff] %v2246_v47  ;;  %v1343_v52 = vadd.s32 8, %v2172_v54  ;;  %v2262_v9 = vmax.f32 %v1186_v5, 0.0  ;;  %vm2284_vm2 = vcmp.lt.f32.partialorder %v925_v20, 0.0004427343 }
  0x35   : > { %v2201_v22 = vmax.f32 %v1181_v51, 0.0  ;;  %v2249_v51 = vpop.eup %1845  ;;  %v943_v5 = vand.u32 2147483647, %v2217_v30  ;;  %3504 = vst [vmem:[#allocation6_spill] sm:$0xff] %v2329_v39 }
  0x36   : > { %v2211_v23 = vmul.f32 %v705_v55, %v2079_v31  ;;  %v2223_v31 = vmul.f32 %v704_v4, %v2090_v45  ;;  %v937_v45 = vadd.f32 1.0, %v2217_v30  ;;  %v914_v55 = vadd.f32 1.0, %v913_v36 }
  0x37   : > { %563 = vperm.xlu1 %1834, %v2094_v53   ;;  %558 = vperm.xlu0 %1833, %v2097_v56   ;;  %v842_v53 = vmul.f32 1.442695, %v803_v42  ;;  %v910_v56 = vadd.f32 1.0, %v2163_v48  ;;  %v2242_v42 = vld [vmem:[%s2057_s23 + $0x40] sm:$0xff]  ;;  %v940_v4 = vmul.f32 -0.5, %v2217_v30  ;;  %v928_v21 = vadd.f32 1.0, %v2249_v51 }
  0x38   : > { %3490 = vst [vmem:[#allocation2_spill] sm:$0xff] %v2211_v23  ;;  %v772_v15 = vand.u32 2147483647, %v2242_v42  ;;  %vm2323_vm4 = vcmp.lt.f32.partialorder %v943_v5, 0.0004427343 }
  0x39   : > { %1847 = vpow2.f32 %v842_v53 }
  0x3a   : > { %1849 = vlog2.f32 %v910_v56  ;;  %v896_v56 = vadd.f32 1.0, %v895_v46  ;;  %v941_v46 = vadd.f32 1.0, %v940_v4 }
  0x3b   : > { %573 = vperm.xlu1 %1834, %v2101_v60   ;;  %568 = vperm.xlu0 %1833, %v2103_v61   ;;  %v773_v60 = vand.u32 2147483647, %v2197_v7  ;;  %v919_v61 = vadd.f32 1.0, %v2199_v8  ;;  %1851 = vpow2.f32 %v840_v29  ;;  %v2272_v29 = vmul.f32 %v2163_v48, %v914_v55  ;;  %v2311_v55 = vld [vmem:[%s2132_s26 + $0x48] sm:$0xff] }
  0x3c   : > { %1853 = vlog2.f32 %v892_v32  ;;  %3501 = vst [vmem:[#allocation5_spill] sm:$0xff] %v2311_v55 }
  0x3d   : > { %v805_v41 = vsub.f32 0.0, %v773_v60  ;;  %1855 = vlog2.f32 %v919_v61  ;;  %v804_v60 = vsub.f32 0.0, %v772_v15 }
  0x3e   : > { %1857 = vlog2.f32 %v901_v37  ;;  %v931_v37 = vmul.f32 -0.5, %v2249_v51 }
  0x3f   : > { %583 = vperm.xlu1 %1834, %v2107_v1   ;;  %578 = vperm.xlu0 %1833, %v2114_v6   ;;  %v916_v1 = vand.u32 2147483647, %v2163_v48  ;;  %v922_v6 = vmul.f32 -0.5, %v2199_v8  ;;  %1859 = vlog2.f32 %v937_v45  ;;  %v846_v53 = vmul.f32 1.442695, %v805_v41  ;;  %v2290_v45 = vld [vmem:[%s2057_s23 + $0x58] sm:$0xff] }
  0x40   : > { %v905_v48 = vadd.f32 1.0, %v904_v63  ;;  %v2293_v41 = vmul.f32 %v2187_v0, %v896_v56  ;;  %v844_v63 = vmul.f32 1.442695, %v804_v60  ;;  %v932_v4 = vadd.f32 1.0, %v931_v37 }
  0x41   : > { %v923_v11 = vadd.f32 1.0, %v922_v6  ;;  %vm2274_vm0 = vcmp.lt.f32.partialorder %v916_v1, 0.0004427343  ;;  %1861 = vpow2.f32 %v846_v53 }
  0x42   : > { %1863 = vlog2.f32 %v928_v21  ;;  %v906_v56 = vmul.f32 %v2206_v14, %v905_v48  ;;  %v709_v21 = vsub.f32 1.0, %v2311_v55  ;;  %v1189_v14 = vsub.f32 0.0, %v2197_v7 }
  0x43   : > { %593 = vperm.xlu1 %1834, %v2119_v12   ;;  %588 = vperm.xlu0 %1833, %v2121_v13   ;;  %v2266_v12 = vadd.s32 %v2204_v10, %v1343_v52  ;;  %v1344_v13 = vadd.s32 16, %v2172_v54  ;;  %v2269_v27 = vpop.eup %1847  ;;  %v2302_v1 = vmul.f32 %v2199_v8, %v923_v11  ;;  %v934_v52 = vand.u32 2147483647, %v2249_v51 }
  0x44   : > { %v1850_v61 = vpop.eup %1849  ;;  %v955_v0 = vadd.f32 1.0, %v2269_v27  ;;  %v775_v8 = vand.u32 2147483647, %v2290_v45  ;;  %v708_v48 = vsub.f32 1.0, %v2329_v39  ;;  %v958_v5 = vmul.f32 -0.5, %v2269_v27 }
  0x45   : > { %v912_v15 = vmul.f32 0.6931472, %v1850_v61  ;;  %v2314_v20 = vadd.s32 %v2204_v10, %v1344_v13  ;;  %v942_v61 = vmul.f32 %v2217_v30, %v941_v46  ;;  %vm2336_vm5 = vcmp.lt.f32.partialorder %v934_v52, 0.0004427343 }
  0x46   : > { %1865 = vlog2.f32 %v955_v0  ;;  %v2347_v32 = vmul.f32 %v709_v21, %v2197_v7  ;;  %v2361_v7 = vmax.f32 %v1189_v14, 0.0 }
  0x47   : > { %603 = vperm.xlu1 %1834, %v2124_v17   ;;  %598 = vperm.xlu0 %1833, %v2126_v18   ;;  %v2297_v17 = vld [vmem:[%s2057_s23 + $0x50] sm:$0xff]  ;;  %v2299_v18 = vpop.eup %1851  ;;  %v918_v30 = vsel %vm2274_vm0, %v2272_v29, %v912_v15  ;;  %1867 = vpow2.f32 %v844_v63 }
  0x48   : > { %v1854_v57 = vpop.eup %1853  ;;  %v774_v11 = vand.u32 2147483647, %v2297_v17  ;;  %v946_v60 = vadd.f32 1.0, %v2299_v18  ;;  %3507 = vst [vmem:[#allocation7_spill] sm:$0xff] %v2347_v32  ;;  %v949_v15 = vmul.f32 -0.5, %v2299_v18 }
  0x49   : > { %v1856_v53 = vpop.eup %1855  ;;  %v894_v47 = vmul.f32 0.6931472, %v1854_v57  ;;  %v2344_v57 = vmul.f32 %v2249_v51, %v932_v4  ;;  %v2364_v51 = vmul.f32 %v708_v48, %v2242_v42  ;;  %v952_v33 = vand.u32 2147483647, %v2299_v18 }
  0x4a   : > { %v1858_v19 = vpop.eup %1857  ;;  %v921_v37 = vmul.f32 0.6931472, %v1856_v53  ;;  %v806_v29 = vsub.f32 0.0, %v774_v11  ;;  %1869 = vlog2.f32 %v946_v60  ;;  %v2351_v53 = vld [vmem:[%s2057_s23 + $0x68] sm:$0xff]  ;;  %v959_v11 = vadd.f32 1.0, %v958_v5  ;;  %v2372_v60 = vld [vmem:[%s2057_s23 + $0x60] sm:$0xff] }
  0x4b   : > { %613 = vperm.xlu1 %1834, %v2138_v24   ;;  %608 = vperm.xlu0 %1833, %v2140_v25   ;;  %v807_v24 = vsub.f32 0.0, %v775_v8  ;;  %v1860_v25 = vpop.eup %1859  ;;  %v903_v0 = vmul.f32 0.6931472, %v1858_v19  ;;  %3508 = vst [vmem:[#allocation8_spill] sm:$0xff] %v2364_v51  ;;  %v961_v19 = vand.u32 2147483647, %v2269_v27 }
  0x4c   : > { %v939_v52 = vmul.f32 0.6931472, %v1860_v25  ;;  %v2353_v63 = vpop.eup %1861  ;;  %v927_v21 = vsel %vm2284_vm2, %v2302_v1, %v921_v37  ;;  %v777_v36 = vand.u32 2147483647, %v2351_v53  ;;  %v776_v14 = vand.u32 2147483647, %v2372_v60 }
  0x4d   : > { %v850_v8 = vmul.f32 1.442695, %v807_v24  ;;  %v1864_v4 = vpop.eup %1863  ;;  %v950_v24 = vadd.f32 1.0, %v949_v15  ;;  %vm2393_vm6 = vcmp.lt.f32.partialorder %v961_v19, 0.0004427343 }
  0x4e   : > { %v945_v1 = vsel %vm2323_vm4, %v942_v61, %v939_v52  ;;  %v930_v6 = vmul.f32 0.6931472, %v1864_v4  ;;  %v809_v13 = vsub.f32 0.0, %v777_v36  ;;  %vm2402_vm7 = vcmp.lt.f32.partialorder %v952_v33, 0.0004427343 }
  0x4f   : > { %623 = vperm.xlu1 %1834, %v2142_v26   ;;  %618 = vperm.xlu0 %1833, %v2145_v28   ;;  %v2356_v26 = vadd.f32 %v2168_v50, %v918_v30  ;;  %v900_v28 = vsel %vm2278_vm1, %v2293_v41, %v894_v47  ;;  %v1188_v50 = vsub.f32 0.0, %v2242_v42  ;;  %v909_v47 = vsel %vm2304_vm3, %v906_v56, %v903_v0 }
  0x50   : > { %v848_v41 = vmul.f32 1.442695, %v806_v29  ;;  %v973_v42 = vadd.f32 1.0, %v2353_v63  ;;  %1871 = vpow2.f32 %v850_v8  ;;  %v1346_v56 = vadd.s32 32, %v2172_v54  ;;  %v1866_v48 = vpop.eup %1865  ;;  %v2415_v29 = vld [vmem:[%s2132_s26 + $0x58] sm:$0xff] }
  0x51   : > { %v2391_v25 = vadd.f32 %v2201_v22, %v909_v47  ;;  %v2407_v22 = vld [vmem:[%s2057_s23 + $0x78] sm:$0xff]  ;;  %v2409_v37 = vpop.eup %1867  ;;  %v951_v5 = vmul.f32 %v2299_v18, %v950_v24  ;;  %v2412_v0 = vmax.f32 %v1188_v50, 0.0  ;;  %3513 = vst [vmem:[#allocation9_spill] sm:$0xff] %v2415_v29  ;;  %v1345_v52 = vadd.s32 24, %v2172_v54 }
  0x52   : > { %1873 = vpow2.f32 %v848_v41  ;;  %v711_v15 = vsub.f32 1.0, %v2415_v29  ;;  %v1191_v8 = vsub.f32 0.0, %v2290_v45  ;;  %v2427_v18 = vadd.s32 %v2204_v10, %v1346_v56  ;;  %v2559_v29 = vld [vmem:[%s2057_s23 + $0x98] sm:$0xff] }
  0x53   : > { %633 = vperm.xlu1 %1834, %v2158_v43   ;;  %628 = vperm.xlu0 %1833, %v2160_v44   ;;  %v2384_v43 = vadd.f32 %v2181_v59, %v900_v28  ;;  %v2387_v44 = vadd.f32 %v2190_v2, %v927_v21  ;;  %v2399_v59 = vadd.f32 %v2213_v16, %v945_v1  ;;  %1875 = vlog2.f32 %v973_v42  ;;  %v2424_v28 = vld [vmem:[%s2132_s26 + $0x50] sm:$0xff] }
  0x54   : > { %v960_v2 = vmul.f32 %v2269_v27, %v959_v11  ;;  %v808_v16 = vsub.f32 0.0, %v776_v14  ;;  %v936_v27 = vsel %vm2336_vm5, %v2344_v57, %v930_v6  ;;  %3514 = vst [vmem:[#allocation10_spill] sm:$0xff] %v2424_v28  ;;  %v1870_v4 = vpop.eup %1869  ;;  %v710_v21 = vsub.f32 1.0, %v2424_v28 }
  0x55   : > { %v854_v11 = vmul.f32 1.442695, %v809_v13  ;;  %v779_v19 = vand.u32 2147483647, %v2407_v22  ;;  %v957_v50 = vmul.f32 0.6931472, %v1866_v48  ;;  %v2435_v33 = vadd.f32 %v2231_v38, %v936_v27 }
  0x56   : > { %v964_v46 = vadd.f32 1.0, %v2409_v37  ;;  %v1190_v57 = vsub.f32 0.0, %v2297_v17  ;;  %v1348_v47 = vadd.s32 48, %v2172_v54  ;;  %v976_v41 = vmul.f32 -0.5, %v2353_v63 }
  0x57   : > { %v979_v36 = vand.u32 2147483647, %v2353_v63  ;;  %v852_v1 = vmul.f32 1.442695, %v808_v16  ;;  %v948_v24 = vmul.f32 0.6931472, %v1870_v4  ;;  %v2440_v42 = vadd.s32 %v2204_v10, %v1345_v52 }
  0x58   : > { %v2443_v6 = vmul.f32 %v711_v15, %v2290_v45  ;;  %v2445_v56 = vmax.f32 %v1191_v8, 0.0  ;;  %v2450_v38 = vmul.f32 %v710_v21, %v2297_v17  ;;  %v1347_v14 = vadd.s32 40, %v2172_v54  ;;  %v2454_v16 = vld [vmem:[%s2057_s23 + $0x70] sm:$0xff]  ;;  %v2464_v15 = vld [vmem:[%s2132_s26 + $0x68] sm:$0xff] }
  0x59   : > { %1877 = vpow2.f32 %v854_v11  ;;  %v811_v48 = vsub.f32 0.0, %v779_v19  ;;  %v963_v27 = vsel %vm2393_vm6, %v960_v2, %v957_v50  ;;  %v2458_v45 = vmax.f32 %v1190_v57, 0.0  ;;  %3517 = vst [vmem:[#allocation13_spill] sm:$0xff] %v2464_v15  ;;  %v2472_v21 = vld [vmem:[%s2057_s23 + $0x88] sm:$0xff] }
  0x5a   : > { %3515 = vst [vmem:[#allocation11_spill] sm:$0xff] %v2443_v6  ;;  %v2447_v13 = vpop.eup %1871  ;;  %3516 = vst [vmem:[#allocation12_spill] sm:$0xff] %v2450_v38  ;;  %1879 = vlog2.f32 %v964_v46  ;;  %v2461_v52 = vadd.s32 %v2204_v10, %v1348_v47  ;;  %v977_v17 = vadd.f32 1.0, %v976_v41  ;;  %vm2466_vm8 = vcmp.lt.f32.partialorder %v979_v36, 0.0004427343  ;;  %v2489_v36 = vld [vmem:[%s2132_s26 + $0x60] sm:$0xff] }
  0x5b   : > { %v713_v4 = vsub.f32 1.0, %v2464_v15  ;;  %1881 = vpow2.f32 %v852_v1  ;;  %v954_v2 = vsel %vm2402_vm7, %v951_v5, %v948_v24  ;;  %v967_v11 = vmul.f32 -0.5, %v2409_v37  ;;  %3521 = vst [vmem:[#allocation15_spill] sm:$0xff] %v2489_v36 }
  0x5c   : > { %v2474_v61 = vpop.eup %1873  ;;  %v991_v19 = vadd.f32 1.0, %v2447_v13  ;;  %v778_v50 = vand.u32 2147483647, %v2454_v16  ;;  %v2482_v57 = vadd.f32 %v2239_v40, %v963_v27  ;;  %v2485_v47 = vadd.s32 %v2204_v10, %v1347_v14 }
  0x5d   : > { %v1876_v46 = vpop.eup %1875  ;;  %v1193_v41 = vsub.f32 0.0, %v2351_v53  ;;  %v858_v1 = vmul.f32 1.442695, %v811_v48  ;;  %v970_v30 = vand.u32 2147483647, %v2409_v37  ;;  %v712_v5 = vsub.f32 1.0, %v2489_v36 }
  0x5e   : > { %3520 = vst [vmem:[#allocation14_spill] sm:$0xff] %v2482_v57  ;;  %v810_v24 = vsub.f32 0.0, %v778_v50  ;;  %v781_v6 = vand.u32 2147483647, %v2472_v21  ;;  %v2495_v38 = vadd.f32 %v2262_v9, %v954_v2  ;;  %v978_v40 = vmul.f32 %v2353_v63, %v977_v17 }
  0x5f   : > { %v982_v14 = vadd.f32 1.0, %v2474_v61  ;;  %v2500_v27 = vmul.f32 %v713_v4, %v2351_v53  ;;  %v975_v15 = vmul.f32 0.6931472, %v1876_v46  ;;  %v968_v48 = vadd.f32 1.0, %v967_v11  ;;  %v2515_v4 = vld [vmem:[%s2132_s26 + $0x78] sm:$0xff] }
  0x60   : > { %3522 = vst [vmem:[#allocation16_spill] sm:$0xff] %v2495_v38  ;;  %1883 = vlog2.f32 %v991_v19  ;;  %v1192_v36 = vsub.f32 0.0, %v2372_v60  ;;  %v994_v50 = vmul.f32 -0.5, %v2447_v13  ;;  %v856_v32 = vmul.f32 1.442695, %v810_v24  ;;  %3527 = vst [vmem:[#allocation19_spill] sm:$0xff] %v2515_v4 }
  0x61   : > { %3523 = vst [vmem:[#allocation17_spill] sm:$0xff] %v2500_v27  ;;  %1885 = vpow2.f32 %v858_v1  ;;  %v813_v9 = vsub.f32 0.0, %v781_v6  ;;  %vm2504_vm9 = vcmp.lt.f32.partialorder %v970_v30, 0.0004427343  ;;  %v2508_v63 = vmax.f32 %v1193_v41, 0.0  ;;  %v2522_v1 = vld [vmem:[%s2057_s23 + $0x80] sm:$0xff] }
  0x62   : > { %v2511_v53 = vmul.f32 %v712_v5, %v2372_v60  ;;  %v1350_v17 = vadd.s32 64, %v2172_v54  ;;  %1887 = vlog2.f32 %v982_v14  ;;  %v1349_v19 = vadd.s32 56, %v2172_v54 }
  0x63   : > { %v2517_v11 = vpop.eup %1877  ;;  %v715_v6 = vsub.f32 1.0, %v2515_v4  ;;  %v862_v46 = vmul.f32 1.442695, %v813_v9  ;;  %v981_v60 = vsel %vm2466_vm8, %v978_v40, %v975_v15  ;;  %v969_v30 = vmul.f32 %v2409_v37, %v968_v48  ;;  %v2540_v15 = vld [vmem:[%s2132_s26 + $0x70] sm:$0xff] }
  0x64   : > { %3526 = vst [vmem:[#allocation18_spill] sm:$0xff] %v2511_v53  ;;  %v1880_v41 = vpop.eup %1879  ;;  %v997_v5 = vand.u32 2147483647, %v2447_v13  ;;  %v2528_v24 = vmax.f32 %v1192_v36, 0.0  ;;  %v995_v14 = vadd.f32 1.0, %v994_v50  ;;  %v985_v53 = vmul.f32 -0.5, %v2474_v61 }
  0x65   : > { %v2530_v27 = vpop.eup %1881  ;;  %v988_v9 = vand.u32 2147483647, %v2474_v61  ;;  %1889 = vpow2.f32 %v856_v32  ;;  %v1009_v4 = vadd.f32 1.0, %v2517_v11  ;;  %v2536_v8 = vadd.s32 %v2204_v10, %v1350_v17  ;;  %3528 = vst [vmem:[#allocation20_spill] sm:$0xff] %v2540_v15 }
  0x66   : > { %v1195_v37 = vsub.f32 0.0, %v2407_v22  ;;  %v780_v36 = vand.u32 2147483647, %v2522_v1  ;;  %v2544_v40 = vadd.s32 %v2204_v10, %v1349_v19  ;;  %v2547_v48 = vmul.f32 %v715_v6, %v2407_v22 }
  0x67   : > { %v714_v50 = vsub.f32 1.0, %v2540_v15  ;;  %1891 = vpow2.f32 %v862_v46  ;;  %v2551_v32 = vadd.f32 %v2361_v7, %v981_v60  ;;  %v966_v17 = vmul.f32 0.6931472, %v1880_v41 }
  0x68   : > { %3529 = vst [vmem:[#allocation21_spill] sm:$0xff] %v2547_v48  ;;  %vm2553_vm10 = vcmp.lt.f32.partialorder %v997_v5, 0.0004427343  ;;  %v1000_v28 = vadd.f32 1.0, %v2530_v27  ;;  %v996_v19 = vmul.f32 %v2447_v13, %v995_v14  ;;  %v986_v22 = vadd.f32 1.0, %v985_v53  ;;  %v2571_v5 = vld [vmem:[%s2132_s26 + $0x88] sm:$0xff] }
  0x69   : > { %3530 = vst [vmem:[#allocation22_spill] sm:$0xff] %v2551_v32  ;;  %vm2562_vm11 = vcmp.lt.f32.partialorder %v988_v9, 0.0004427343  ;;  %v812_v46 = vsub.f32 0.0, %v780_v36  ;;  %1893 = vlog2.f32 %v1009_v4  ;;  %v1012_v7 = vmul.f32 -0.5, %v2517_v11  ;;  %3535 = vst [vmem:[#allocation23_spill] sm:$0xff] %v2571_v5 }
  0x6a   : > { %v1884_v48 = vpop.eup %1883  ;;  %v2567_v41 = vmax.f32 %v1195_v37, 0.0  ;;  %v1194_v60 = vsub.f32 0.0, %v2454_v16  ;;  %v1003_v13 = vmul.f32 -0.5, %v2530_v27  ;;  %v1352_v53 = vadd.s32 80, %v2172_v54 }
  0x6b   : > { %v2573_v15 = vpop.eup %1885  ;;  %v860_v14 = vmul.f32 1.442695, %v812_v46  ;;  %v783_v9 = vand.u32 2147483647, %v2559_v29  ;;  %v972_v4 = vsel %vm2504_vm9, %v969_v30, %v966_v17  ;;  %1895 = vlog2.f32 %v1000_v28 }
  0x6c   : > { %v1351_v37 = vadd.s32 72, %v2172_v54  ;;  %v717_v36 = vsub.f32 1.0, %v2571_v5  ;;  %v1888_v32 = vpop.eup %1887  ;;  %v987_v39 = vmul.f32 %v2474_v61, %v986_v22  ;;  %v1015_v55 = vand.u32 2147483647, %v2517_v11 }
  0x6d   : > { %v2585_v38 = vmul.f32 %v714_v50, %v2454_v16  ;;  %1897 = vpow2.f32 %v860_v14  ;;  %v993_v46 = vmul.f32 0.6931472, %v1884_v48  ;;  %v1013_v57 = vadd.f32 1.0, %v1012_v7  ;;  %v2606_v7 = vld [vmem:[%s2132_s26 + $0x80] sm:$0xff]  ;;  %v2609_v14 = vld [vmem:[%s2057_s23 + $0x90] sm:$0xff] }
  0x6e   : > { %v1027_v2 = vadd.f32 1.0, %v2573_v15  ;;  %v815_v28 = vsub.f32 0.0, %v783_v9  ;;  %v2591_v17 = vadd.f32 %v2412_v0, %v972_v4  ;;  %v1004_v5 = vadd.f32 1.0, %v1003_v13  ;;  %3540 = vst [vmem:[#allocation28_spill] sm:$0xff] %v2606_v7 }
  0x6f   : > { %3536 = vst [vmem:[#allocation24_spill] sm:$0xff] %v2585_v38  ;;  %v2588_v30 = vpop.eup %1889  ;;  %v1006_v61 = vand.u32 2147483647, %v2530_v27  ;;  %v2594_v22 = vmax.f32 %v1194_v60, 0.0  ;;  %v984_v23 = vmul.f32 0.6931472, %v1888_v32  ;;  %v2597_v16 = vadd.s32 %v2204_v10, %v1352_v53 }
  0x70   : > { %3537 = vst [vmem:[#allocation25_spill] sm:$0xff] %v2591_v17  ;;  %v2600_v48 = vadd.s32 %v2204_v10, %v1351_v37  ;;  %v2603_v50 = vmul.f32 %v717_v36, %v2472_v21  ;;  %vm2613_vm12 = vcmp.lt.f32.partialorder %v1015_v55, 0.0004427343  ;;  %v1197_v32 = vsub.f32 0.0, %v2472_v21  ;;  %v2662_v38 = vld [vmem:[%s2057_s23 + $0xa0] sm:$0xff] }
  0x71   : > { %3538 = vst [vmem:[#allocation26_spill] sm:$0xff] %v2597_v16  ;;  %v2611_v0 = vpop.eup %1891  ;;  %v716_v60 = vsub.f32 1.0, %v2606_v7  ;;  %v866_v53 = vmul.f32 1.442695, %v815_v28  ;;  %v999_v9 = vsel %vm2553_vm10, %v996_v19, %v993_v46  ;;  %v1014_v4 = vmul.f32 %v2517_v11, %v1013_v57 }
  0x72   : > { %3539 = vst [vmem:[#allocation27_spill] sm:$0xff] %v2603_v50  ;;  %1899 = vlog2.f32 %v1027_v2  ;;  %v1018_v37 = vadd.f32 1.0, %v2588_v30  ;;  %v2624_v36 = vmul.f32 %v2530_v27, %v1004_v5  ;;  %vm2626_vm13 = vcmp.lt.f32.partialorder %v1006_v61, 0.0004427343  ;;  %v2637_v27 = vld [vmem:[%s2057_s23 + $0xa8] sm:$0xff] }
  0x73   : > { %1901 = vpow2.f32 %v866_v53  ;;  %v782_v21 = vand.u32 2147483647, %v2609_v14  ;;  %v1894_v50 = vpop.eup %1893  ;;  %v990_v51 = vsel %vm2562_vm11, %v987_v39, %v984_v23  ;;  %v1030_v19 = vmul.f32 -0.5, %v2573_v15 }
  0x74   : > { %v1045_v57 = vadd.f32 1.0, %v2611_v0  ;;  %v1196_v11 = vsub.f32 0.0, %v2522_v1  ;;  %v2640_v5 = vadd.f32 %v2445_v56, %v999_v9  ;;  %v2642_v46 = vmax.f32 %v1197_v32, 0.0 }
  0x75   : > { %v2645_v2 = vmul.f32 %v716_v60, %v2522_v1  ;;  %v814_v28 = vsub.f32 0.0, %v782_v21  ;;  %v1896_v23 = vpop.eup %1895  ;;  %v1033_v39 = vand.u32 2147483647, %v2573_v15  ;;  %1903 = vlog2.f32 %v1018_v37  ;;  %v2657_v1 = vld [vmem:[%s2132_s26 + $0x98] sm:$0xff] }
  0x76   : > { %3545 = vst [vmem:[#allocation29_spill] sm:$0xff] %v2640_v5  ;;  %v1354_v6 = vadd.s32 96, %v2172_v54  ;;  %v1353_v61 = vadd.s32 88, %v2172_v54  ;;  %v2653_v56 = vadd.f32 %v2458_v45, %v990_v51  ;;  %v1011_v32 = vmul.f32 0.6931472, %v1894_v50  ;;  %3548 = vst [vmem:[#allocation32_spill] sm:$0xff] %v2657_v1 }
  0x77   : > { %3546 = vst [vmem:[#allocation30_spill] sm:$0xff] %v2645_v2  ;;  %v2650_v53 = vpop.eup %1897  ;;  %v1021_v9 = vmul.f32 -0.5, %v2588_v30  ;;  %v785_v60 = vand.u32 2147483647, %v2637_v27  ;;  %v1031_v21 = vadd.f32 1.0, %v1030_v19  ;;  %1905 = vlog2.f32 %v1045_v57 }
  0x78   : > { %3547 = vst [vmem:[#allocation31_spill] sm:$0xff] %v2653_v56  ;;  %v719_v37 = vsub.f32 1.0, %v2657_v1  ;;  %v864_v2 = vmul.f32 1.442695, %v814_v28  ;;  %v1002_v7 = vmul.f32 0.6931472, %v1896_v23  ;;  %v2674_v19 = vadd.s32 %v2204_v10, %v1354_v6 }
  0x79   : > { %v1048_v5 = vmul.f32 -0.5, %v2611_v0  ;;  %v1036_v45 = vadd.f32 1.0, %v2650_v53  ;;  %v2666_v51 = vmax.f32 %v1196_v11, 0.0  ;;  %vm2668_vm14 = vcmp.lt.f32.partialorder %v1033_v39, 0.0004427343 }
  0x7a   : > { %v1024_v56 = vand.u32 2147483647, %v2588_v30  ;;  %3551 = vst [vmem:[#allocation33_spill] sm:$0xff] %v2674_v19  ;;  %v2677_v57 = vadd.s32 %v2204_v10, %v1353_v61  ;;  %v1017_v28 = vsel %vm2613_vm12, %v1014_v4, %v1011_v32  ;;  %v1022_v23 = vadd.f32 1.0, %v1021_v9  ;;  %v2694_v32 = vld [vmem:[%s2132_s26 + $0x90] sm:$0xff] }
  0x7b   : > { %v817_v1 = vsub.f32 0.0, %v785_v60  ;;  %v784_v11 = vand.u32 2147483647, %v2662_v38  ;;  %v1032_v17 = vmul.f32 %v2573_v15, %v1031_v21  ;;  %v2684_v16 = vmul.f32 %v719_v37, %v2559_v29  ;;  %3553 = vst [vmem:[#allocation35_spill] sm:$0xff] %v2694_v32 }
  0x7c   : > { %v1900_v39 = vpop.eup %1899  ;;  %v1199_v6 = vsub.f32 0.0, %v2559_v29  ;;  %1907 = vpow2.f32 %v864_v2  ;;  %v1008_v13 = vsel %vm2626_vm13, %v2624_v36, %v1002_v7  ;;  %v1049_v4 = vadd.f32 1.0, %v1048_v5 }
  0x7d   : > { %3552 = vst [vmem:[#allocation34_spill] sm:$0xff] %v2684_v16  ;;  %v2687_v19 = vpop.eup %1901  ;;  %v1051_v61 = vand.u32 2147483647, %v2611_v0  ;;  %1909 = vlog2.f32 %v1036_v45  ;;  %v2697_v15 = vadd.f32 %v2508_v63, %v1017_v28  ;;  %vm2699_vm15 = vcmp.lt.f32.partialorder %v1024_v56, 0.0004427343  ;;  %v2733_v16 = vld [vmem:[%s2132_s26 + $0xa0] sm:$0xff] }
  0x7e   : > { %v718_v29 = vsub.f32 1.0, %v2694_v32  ;;  %v816_v2 = vsub.f32 0.0, %v784_v11  ;;  %v1029_v60 = vmul.f32 0.6931472, %v1900_v39  ;;  %v1023_v7 = vmul.f32 %v2588_v30, %v1022_v23  ;;  %3561 = vst [vmem:[#allocation39_spill] sm:$0xff] %v2733_v16 }
  0x7f   : > { %v1198_v36 = vsub.f32 0.0, %v2609_v14  ;;  %v870_v55 = vmul.f32 1.442695, %v817_v1  ;;  %v1904_v5 = vpop.eup %1903  ;;  %v2707_v21 = vadd.f32 %v2528_v24, %v1008_v13  ;;  %v1039_v63 = vmul.f32 -0.5, %v2650_v53  ;;  %v2721_v24 = vld [vmem:[%s2132_s26 + $0xa8] sm:$0xff] }
  0x80   : > { %v1063_v56 = vadd.f32 1.0, %v2687_v19  ;;  %v2711_v37 = vmax.f32 %v1199_v6, 0.0  ;;  %v1050_v45 = vmul.f32 %v2611_v0, %v1049_v4  ;;  %vm2714_vm0 = vcmp.lt.f32.partialorder %v1051_v61, 0.0004427343  ;;  %3559 = vst [vmem:[#allocation37_spill] sm:$0xff] %v2721_v24 }
  0x81   : > { %3556 = vst [vmem:[#allocation36_spill] sm:$0xff] %v2707_v21  ;;  %v1356_v30 = vadd.s32 112, %v2172_v54  ;;  %v1355_v1 = vadd.s32 104, %v2172_v54  ;;  %v1906_v23 = vpop.eup %1905  ;;  %v1042_v11 = vand.u32 2147483647, %v2650_v53  ;;  %v2725_v39 = vmul.f32 %v718_v29, %v2609_v14  ;;  %v2738_v29 = vld [vmem:[%s2057_s23 + $0xb8] sm:$0xff] }
  0x82   : > { %v721_v6 = vsub.f32 1.0, %v2721_v24  ;;  %v868_v0 = vmul.f32 1.442695, %v816_v2  ;;  %v1035_v13 = vsel %vm2668_vm14, %v1032_v17, %v1029_v60  ;;  %v1020_v4 = vmul.f32 0.6931472, %v1904_v5  ;;  %3562 = vst [vmem:[#allocation40_spill] sm:$0xff] %v2738_v29 }
  0x83   : > { %3560 = vst [vmem:[#allocation38_spill] sm:$0xff] %v2725_v39  ;;  %v2730_v61 = vmax.f32 %v1198_v36, 0.0  ;;  %1911 = vpow2.f32 %v870_v55  ;;  %v1040_v32 = vadd.f32 1.0, %v1039_v63  ;;  %v1201_v21 = vsub.f32 0.0, %v2637_v27  ;;  %v370_v60 = vld [vmem:[%s2057_s23 + $0xb0] sm:$0xff] }
  0x84   : > { %1913 = vlog2.f32 %v1063_v56  ;;  %v720_v14 = vsub.f32 1.0, %v2733_v16  ;;  %v1047_v24 = vmul.f32 0.6931472, %v1906_v23  ;;  %v1066_v2 = vmul.f32 -0.5, %v2687_v19 }
  0x85   : > { %v2742_v50 = vadd.s32 %v2204_v10, %v1356_v30  ;;  %v2745_v17 = vadd.s32 %v2204_v10, %v1355_v1  ;;  %v2751_v55 = vadd.f32 %v2567_v41, %v1035_v13  ;;  %vm2753_vm1 = vcmp.lt.f32.partialorder %v1042_v11, 0.0004427343 }
  0x86   : > { %v2748_v36 = vpop.eup %1907  ;;  %v2758_v63 = vmul.f32 %v721_v6, %v2637_v27  ;;  %1915 = vpow2.f32 %v868_v0  ;;  %v1026_v30 = vsel %vm2699_vm15, %v1023_v7, %v1020_v4  ;;  %v1200_v1 = vsub.f32 0.0, %v2662_v38 }
  0x87   : > { %v1910_v56 = vpop.eup %1909  ;;  %v1358_v23 = vadd.s32 128, %v2172_v54  ;;  %v787_v39 = vand.u32 2147483647, %v2738_v29  ;;  %v1041_v41 = vmul.f32 %v2650_v53, %v1040_v32  ;;  %v2766_v11 = vmax.f32 %v1201_v21, 0.0 }
  0x88   : > { %3565 = vst [vmem:[#allocation41_spill] sm:$0xff] %v2758_v63  ;;  %v2769_v13 = vmul.f32 %v720_v14, %v2662_v38  ;;  %v786_v27 = vand.u32 2147483647, %v370_v60  ;;  %v1053_v9 = vsel %vm2714_vm0, %v1050_v45, %v1047_v24  ;;  %v1067_v7 = vadd.f32 1.0, %v1066_v2  ;;  %v2787_v24 = vld [vmem:[%s2132_s26 + $0xb0] sm:$0xff] }
  0x89   : > { %3566 = vst [vmem:[#allocation42_spill] sm:$0xff] %v2766_v11  ;;  %v1069_v6 = vand.u32 2147483647, %v2687_v19  ;;  %v1357_v0 = vadd.s32 120, %v2172_v54  ;;  %v2776_v4 = vadd.f32 %v2594_v22, %v1026_v30  ;;  %v1038_v53 = vmul.f32 0.6931472, %v1910_v56 }
  0x8a   : > { %3567 = vst [vmem:[#allocation43_spill] sm:$0xff] %v2769_v13  ;;  %v1054_v32 = vadd.f32 1.0, %v2748_v36  ;;  %v1057_v21 = vmul.f32 -0.5, %v2748_v36  ;;  %v2780_v38 = vmax.f32 %v1200_v1, 0.0  ;;  %v2783_v14 = vadd.s32 %v2204_v10, %v1358_v23  ;;  %3569 = vst [vmem:[#allocation45_spill] sm:$0xff] %v2787_v24  ;;  %v2793_v22 = vld [vmem:[%s2132_s26 + $0xb8] sm:$0xff] }
  0x8b   : > { %v819_v28 = vsub.f32 0.0, %v787_v39  ;;  %v1203_v45 = vsub.f32 0.0, %v2738_v29  ;;  %v2790_v2 = vadd.f32 %v2642_v46, %v1053_v9  ;;  %3571 = vst [vmem:[#allocation47_spill] sm:$0xff] %v2793_v22  ;;  %v722_v56 = vsub.f32 1.0, %v2787_v24  ;;  %v2813_v24 = vld [vmem:[%s2057_s23 + $0xc8] sm:$0xff] }
  0x8c   : > { %3568 = vst [vmem:[#allocation44_spill] sm:$0xff] %v2780_v38  ;;  %v818_v30 = vsub.f32 0.0, %v786_v27  ;;  %v1202_v63 = vsub.f32 0.0, %v370_v60  ;;  %v2799_v23 = vmul.f32 %v2687_v19, %v1067_v7  ;;  %vm2801_vm2 = vcmp.lt.f32.partialorder %v1069_v6, 0.0004427343  ;;  %3574 = vst [vmem:[#allocation48_spill] sm:$0xff] %v2813_v24 }
  0x8d   : > { %3570 = vst [vmem:[#allocation46_spill] sm:$0xff] %v2790_v2  ;;  %v2796_v1 = vpop.eup %1911  ;;  %v2806_v29 = vadd.s32 %v2204_v10, %v1357_v0  ;;  %v1044_v11 = vsel %vm2753_vm1, %v1041_v41, %v1038_v53  ;;  %1917 = vlog2.f32 %v1054_v32  ;;  %v1058_v27 = vadd.f32 1.0, %v1057_v21  ;;  %v1963_v38 = vld [vmem:[%s2132_s26 + $0x10] sm:$0xff] }
  0x8e   : > { %v1914_v9 = vpop.eup %1913  ;;  %v1060_v13 = vand.u32 2147483647, %v2748_v36  ;;  %v1084_v19 = vmul.f32 -0.5, %v2796_v1  ;;  %v874_v7 = vmul.f32 1.442695, %v819_v28  ;;  %v2816_v6 = vmax.f32 %v1203_v45, 0.0 }
  0x8f   : > { %v1360_v0 = vadd.s32 144, %v2172_v54  ;;  %vm1407_vm3 = vcmp.lt.s32.totalorder %v2227_v35, 318  ;;  %vm1409_vm4 = vcmp.lt.s32.totalorder %v2314_v20, 318  ;;  %v1081_v5 = vadd.f32 1.0, %v2796_v1 }
  0x90   : > { %3575 = vst [vmem:[#allocation49_spill] sm:$0xff] %v2816_v6  ;;  %v2819_v16 = vpop.eup %1915  ;;  %v2824_v41 = vmul.f32 %v722_v56, %v370_v60  ;;  %v872_v53 = vmul.f32 1.442695, %v818_v30  ;;  %v2826_v32 = vmax.f32 %v1202_v63, 0.0  ;;  %vm1503_vm5 = vcmask 523264  }
  0x91   : > { %v2829_v45 = vadd.f32 %v2666_v51, %v1044_v11  ;;  %v1065_v46 = vmul.f32 0.6931472, %v1914_v9  ;;  %v1075_v22 = vmul.f32 -0.5, %v2819_v16  ;;  %v789_v6 = vand.u32 2147483647, %v2813_v24  ;;  %v2844_v11 = vld [vmem:[%s2132_s26 + $0xc8] sm:$0xff] }
  0x92   : > { %3576 = vst [vmem:[#allocation50_spill] sm:$0xff] %v2824_v41  ;;  %v2836_v56 = vmul.f32 %v2748_v36, %v1058_v27  ;;  %v1085_v30 = vadd.f32 1.0, %v1084_v19  ;;  %1919 = vpow2.f32 %v874_v7  ;;  %v2840_v41 = vadd.s32 %v2204_v10, %v1360_v0  ;;  %3577 = vst [vmem:[#allocation51_spill] sm:$0xff] %v2844_v11 }
  0x93   : > { %v1359_v51 = vadd.s32 136, %v2172_v54  ;;  %vm1408_vm6 = vcmp.lt.s32.totalorder %v2266_v12, 318  ;;  %vm1410_vm7 = vcmp.lt.s32.totalorder %v2440_v42, 318  ;;  %vm2848_vm8 = vcmp.lt.f32.partialorder %v1060_v13, 0.0004427343 }
  0x94   : > { %1921 = vlog2.f32 %v1081_v5  ;;  %v1071_v19 = vsel %vm2801_vm2, %v2799_v23, %v1065_v46  ;;  %v1076_v7 = vadd.f32 1.0, %v1075_v22  ;;  %v821_v0 = vsub.f32 0.0, %v789_v6  ;;  %v1965_v5 = vld [vmem:[%s2132_s26 + $0x8] sm:$0xff]  ;;  %v2873_v46 = vld [vmem:[%s2057_s23 + $0xc0] sm:$0xff] }
  0x95   : > { %v2862_v36 = vmul.f32 %v2796_v1, %v1085_v30  ;;  %v1078_v11 = vand.u32 2147483647, %v2819_v16  ;;  %1923 = vpow2.f32 %v872_v53  ;;  %v2866_v23 = vadd.s32 %v2204_v10, %v1359_v51 }
  0x96   : > { %v489_v21 = vpop.permute.xlu1 %488  ;;  %v479_v28 = vpop.permute.xlu0 %478  ;;  %vm1411_vm9 = vcmp.lt.s32.totalorder %v2427_v18, 318  ;;  %vm1412_vm10 = vcmp.lt.s32.totalorder %v2485_v47, 318  ;;  %v2876_v30 = vadd.f32 %v2711_v37, %v1071_v19  ;;  %v2879_v51 = vmul.f32 %v2819_v16, %v1076_v7 }
  0x97   : > { %v638_v2 = vmul.f32 %v1963_v38, %v489_v21  ;;  %v636_v60 = vmul.f32 %v479_v28, %v2151_v34  ;;  %v1964_v28 = vld [vmem:[%s2132_s26 + $0x18] sm:$0xff]  ;;  %v1918_v22 = vpop.eup %1917  ;;  %vm1413_vm11 = vcmp.lt.s32.totalorder %v2461_v52, 318  ;;  %vm1414_vm12 = vcmp.lt.s32.totalorder %v2544_v40, 318  ;;  %v3597_v40 = vld [vmem:[#allocation7_spill] sm:$0xff] }
  0x98   : > { %v1056_v19 = vmul.f32 0.6931472, %v1918_v22  ;;  %v1204_v22 = vsub.f32 0.0, %v2873_v46  ;;  %vm1415_vm14 = vcmp.lt.s32.totalorder %v2536_v8, 318  ;;  %vm1416_vm15 = vcmp.lt.s32.totalorder %v2600_v48, 318  ;;  %v3605_v8 = vld [vmem:[#allocation11_spill] sm:$0xff] }
  0x99   : > { %v670_v9 = vadd.f32 1.0, %v638_v2  ;;  %v668_v24 = vadd.f32 1.0, %v636_v60  ;;  %v1072_v2 = vadd.f32 1.0, %v2819_v16  ;;  %vm1418_vm1 = vcmp.lt.s32.totalorder %v2677_v57, 318 }
  0x9a   : > { %v494_v38 = vpop.permute.xlu1 %493  ;;  %v484_v27 = vpop.permute.xlu0 %483 }
  0x9b   : > { %v1278_v21 = vmul.f32 %v2356_v26, %v670_v9  ;;  %v1276_v13 = vmul.f32 %v2384_v43, %v668_v24  ;;  %v639_v60 = vmul.f32 %v1964_v28, %v494_v38  ;;  %v637_v63 = vmul.f32 %v1965_v5, %v484_v27  ;;  %v1966_v9 = vld [vmem:[%s2132_s26 + $0x28] sm:$0xff]  ;;  %v1967_v27 = vld [vmem:[%s2132_s26 + $0x20] sm:$0xff] }
  0x9c   : > { %1925 = vlog2.f32 %v1072_v2  ;;  %v788_v2 = vand.u32 2147483647, %v2873_v46  ;;  %v2894_v35 = vpop.eup %1919 }
  0x9d   : > { %v671_v39 = vadd.f32 1.0, %v639_v60  ;;  %v669_v26 = vadd.f32 1.0, %v637_v63  ;;  %v1308_v43 = vadd.f32 %v1276_v13, %v2179_v58  ;;  %v1310_v24 = vadd.f32 %v1278_v21, %v2166_v49 }
  0x9e   : > { %v504_v6 = vpop.permute.xlu1 %503  ;;  %v499_v53 = vpop.permute.xlu0 %498  ;;  %v878_v63 = vmul.f32 1.442695, %v821_v0 }
  0x9f   : > { %v1279_v58 = vmul.f32 %v2387_v44, %v671_v39  ;;  %v1277_v49 = vmul.f32 %v2391_v25, %v669_v26  ;;  %v641_v38 = vmul.f32 %v1966_v9, %v504_v6  ;;  %v640_v21 = vmul.f32 %v1967_v27, %v499_v53  ;;  %v1922_v26 = vpop.eup %1921  ;;  %v1969_v53 = vld [vmem:[%s2132_s26 + $0x30] sm:$0xff] }
  0xa0   : > { %v1439_v13 = vsel %vm1407_vm3, %v1308_v43, 0.0  ;;  %v1441_v37 = vsel %vm1409_vm4, %v1310_v24, 0.0  ;;  %v1362_v39 = vadd.s32 160, %v2172_v54  ;;  %v1968_v24 = vld [vmem:[%s2132_s26 + $0x38] sm:$0xff]  ;;  %v3580_v9 = vand.u32 2147483647, %v2796_v1  ;;  %v2921_v12 = vpop.eup %1923 }
  0xa1   : > { %v673_v7 = vadd.f32 1.0, %v641_v38  ;;  %v672_v28 = vadd.f32 1.0, %v640_v21  ;;  %v1504_v44 = vsel %vm1503_vm5, %v1439_v13, 0.0  ;;  %v1309_v25 = vadd.f32 %v1277_v49, %v2193_v3 }
  0xa2   : > { %1505 = vadd.xlane.f32.xlu0 %v1504_v44  ;;  %v514_v20 = vpop.permute.xlu1 %513  ;;  %v509_v0 = vpop.permute.xlu0 %508  ;;  %v1510_v60 = vsel %vm1503_vm5, %v1441_v37, 0.0  ;;  %v1311_v5 = vadd.f32 %v1279_v58, %v2184_v62  ;;  %vm2906_vm13 = vcmp.lt.f32.partialorder %v3580_v9, 0.0004427343  ;;  %1927 = vpow2.f32 %v878_v63  ;;  %v3583_v37 = vld [vmem:[#allocation2_spill] sm:$0xff] }
  0xa3   : > { %v1281_v3 = vmul.f32 %v2399_v59, %v673_v7  ;;  %v1280_v43 = vmul.f32 %v2435_v33, %v672_v28  ;;  %v643_v6 = vmul.f32 %v1968_v24, %v514_v20  ;;  %v642_v49 = vmul.f32 %v1969_v53, %v509_v0  ;;  %v3585_v28 = vld [vmem:[#allocation16_spill] sm:$0xff]  ;;  %v3587_v0 = vld [vmem:[#allocation6_spill] sm:$0xff] }
  0xa4   : > { %v1440_v62 = vsel %vm1408_vm6, %v1309_v25, 0.0  ;;  %v1442_v58 = vsel %vm1410_vm7, %v1311_v5, 0.0  ;;  %v1062_v59 = vsel %vm2848_vm8, %v2836_v56, %v1056_v19  ;;  %v2924_v56 = vsub.f32 0.0, %v788_v2  ;;  %v3586_v25 = vld [vmem:[#allocation5_spill] sm:$0xff] }
  0xa5   : > { %v675_v33 = vadd.f32 1.0, %v643_v6  ;;  %v674_v27 = vadd.f32 1.0, %v642_v49  ;;  %v1507_v21 = vsel %vm1503_vm5, %v1440_v62, 0.0  ;;  %v1312_v1 = vadd.f32 %v1280_v43, %v2223_v31  ;;  %v3584_v31 = vld [vmem:[#allocation14_spill] sm:$0xff]  ;;  %v3588_v49 = vld [vmem:[#allocation4_spill] sm:$0xff] }
  0xa6   : > { %1508 = vadd.xlane.f32.xlu1 %v1507_v21  ;;  %1511 = vadd.xlane.f32.xlu0 %v1510_v60  ;;  %v524_v42 = vpop.permute.xlu1 %523  ;;  %v519_v13 = vpop.permute.xlu0 %518  ;;  %v1313_v34 = vadd.f32 %v1281_v3, %v3583_v37  ;;  %v2927_v63 = vadd.s32 %v2204_v10, %v1362_v39  ;;  %v2930_v19 = vadd.s32 152, %v2172_v54  ;;  %v1513_v2 = vsel %vm1503_vm5, %v1442_v58, 0.0  ;;  %v3589_v62 = vld [vmem:[#allocation26_spill] sm:$0xff]  ;;  %v3593_v37 = vld [vmem:[#allocation9_spill] sm:$0xff] }
  0xa7   : > { %v1283_v7 = vmul.f32 %v3584_v31, %v675_v33  ;;  %v1282_v44 = vmul.f32 %v3585_v28, %v674_v27  ;;  %v645_v20 = vmul.f32 %v524_v42, %v3586_v25  ;;  %v644_v60 = vmul.f32 %v519_v13, %v3587_v0  ;;  %v1926_v5 = vpop.eup %1925  ;;  %v3590_v33 = vld [vmem:[#allocation3_spill] sm:$0xff]  ;;  %v3591_v21 = vld [vmem:[#allocation22_spill] sm:$0xff]  ;;  %v3592_v42 = vld [vmem:[#allocation25_spill] sm:$0xff] }
  0xa8   : > { %v1443_v3 = vsel %vm1411_vm9, %v1312_v1, 0.0  ;;  %v1444_v39 = vsel %vm1412_vm10, %v1313_v34, 0.0  ;;  %v2942_v43 = vadd.f32 %v2730_v61, %v1062_v59  ;;  %vm1417_vm0 = vcmp.lt.s32.totalorder %v3589_v62, 318  ;;  %v3594_v31 = vld [vmem:[#allocation10_spill] sm:$0xff] }
  0xa9   : > { %v677_v24 = vadd.f32 1.0, %v645_v20  ;;  %v676_v6 = vadd.f32 1.0, %v644_v60  ;;  %v1516_v53 = vsel %vm1503_vm5, %v1443_v3, 0.0  ;;  %v1314_v9 = vadd.f32 %v1282_v44, %v3588_v49  ;;  %v3595_v3 = vld [vmem:[#allocation8_spill] sm:$0xff] }
  0xaa   : > { %1517 = vadd.xlane.f32.xlu1 %v1516_v53  ;;  %1514 = vadd.xlane.f32.xlu0 %v1513_v2  ;;  %v534_v18 = vpop.permute.xlu1 %533  ;;  %v529_v58 = vpop.permute.xlu0 %528  ;;  %v1315_v47 = vadd.f32 %v1283_v7, %v3590_v33  ;;  %v2949_v27 = vmul.f32 0.6931472, %v1922_v26  ;;  %v1099_v61 = vadd.f32 1.0, %v2894_v35  ;;  %v1090_v59 = vadd.f32 1.0, %v2921_v12  ;;  %v3599_v33 = vld [vmem:[#allocation31_spill] sm:$0xff] }
  0xab   : > { %v1285_v1 = vmul.f32 %v3591_v21, %v677_v24  ;;  %v1284_v13 = vmul.f32 %v3592_v42, %v676_v6  ;;  %v647_v34 = vmul.f32 %v534_v18, %v3593_v37  ;;  %v646_v28 = vmul.f32 %v529_v58, %v3594_v31  ;;  %v3596_v24 = vld [vmem:[#allocation33_spill] sm:$0xff] }
  0xac   : > { %v1445_v44 = vsel %vm1413_vm11, %v1314_v9, 0.0  ;;  %v1519_v25 = vsel %vm1503_vm5, %v1444_v39, 0.0  ;;  %v1446_v26 = vsel %vm1414_vm12, %v1315_v47, 0.0  ;;  %v1102_v7 = vmul.f32 -0.5, %v2894_v35  ;;  %v2967_v6 = vpop.eup %1927  ;;  %v3598_v18 = vld [vmem:[#allocation29_spill] sm:$0xff] }
  0xad   : > { %v679_v20 = vadd.f32 1.0, %v647_v34  ;;  %v678_v0 = vadd.f32 1.0, %v646_v28  ;;  %v1522_v60 = vsel %vm1503_vm5, %v1445_v44, 0.0  ;;  %v1316_v2 = vadd.f32 %v1284_v13, %v3595_v3  ;;  %v3600_v21 = vld [vmem:[#allocation13_spill] sm:$0xff]  ;;  %v3601_v13 = vld [vmem:[#allocation15_spill] sm:$0xff] }
  0xae   : > { %vm1419_vm2 = vcmp.lt.s32.totalorder %v3596_v24, 318  ;;  %vm1420_vm3 = vcmp.lt.s32.totalorder %v2745_v17, 318  ;;  %1523 = vadd.xlane.f32.xlu1 %v1522_v60  ;;  %1520 = vadd.xlane.f32.xlu0 %v1519_v25  ;;  %v544_v52 = vpop.permute.xlu1 %543  ;;  %v539_v39 = vpop.permute.xlu0 %538  ;;  %v1317_v53 = vadd.f32 %v1285_v1, %v3597_v40  ;;  %v1089_v49 = vsel %vm2906_vm13, %v2862_v36, %v2949_v27 }
  0xaf   : > { %v1105_v9 = vand.u32 2147483647, %v2894_v35  ;;  %1929 = vlog2.f32 %v1090_v59  ;;  %v1287_v58 = vmul.f32 %v3598_v18, %v679_v20  ;;  %v1286_v47 = vmul.f32 %v3599_v33, %v678_v0  ;;  %v3604_v20 = vld [vmem:[#allocation12_spill] sm:$0xff] }
  0xb0   : > { %v649_v42 = vmul.f32 %v544_v52, %v3600_v21  ;;  %v648_v37 = vmul.f32 %v539_v39, %v3601_v13  ;;  %vm2981_vm4 = vcmp.lt.f32.partialorder %v1078_v11, 0.0004427343  ;;  %v1447_v34 = vsel %vm1415_vm14, %v1316_v2, 0.0  ;;  %v3606_v2 = vld [vmem:[#allocation36_spill] sm:$0xff]  ;;  %v3607_v39 = vld [vmem:[#allocation19_spill] sm:$0xff] }
  0xb1   : > { %v1525_v31 = vsel %vm1503_vm5, %v1446_v26, 0.0  ;;  %v1448_v59 = vsel %vm1416_vm15, %v1317_v53, 0.0  ;;  %1931 = vlog2.f32 %v1099_v61  ;;  %v1528_v25 = vsel %vm1503_vm5, %v1447_v34, 0.0  ;;  %v3608_v53 = vld [vmem:[#allocation20_spill] sm:$0xff]  ;;  %v3610_v34 = vld [vmem:[#allocation17_spill] sm:$0xff] }
  0xb2   : > { %v681_v28 = vadd.f32 1.0, %v649_v42  ;;  %v680_v44 = vadd.f32 1.0, %v648_v37  ;;  %v1318_v0 = vadd.f32 %v1286_v47, %v3604_v20  ;;  %vm1421_vm6 = vcmp.lt.s32.totalorder %v2742_v50, 318  ;;  %1529 = vadd.xlane.f32.xlu1 %v1528_v25  ;;  %1526 = vadd.xlane.f32.xlu0 %v1525_v31  ;;  %v554_v16 = vpop.permute.xlu1 %553  ;;  %v549_v11 = vpop.permute.xlu0 %548  ;;  %v3609_v42 = vld [vmem:[#allocation18_spill] sm:$0xff]  ;;  %v3612_v20 = vld [vmem:[#allocation28_spill] sm:$0xff] }
  0xb3   : > { %v1319_v60 = vadd.f32 %v1287_v58, %v3605_v8  ;;  %v2994_v3 = vmul.f32 0.6931472, %v1926_v5  ;;  %vm1422_vm7 = vcmp.lt.s32.totalorder %v2806_v29, 318  ;;  %v1103_v48 = vadd.f32 1.0, %v1102_v7 }
  0xb4   : > { %v1093_v61 = vmul.f32 -0.5, %v2921_v12  ;;  %v1289_v26 = vmul.f32 %v2697_v15, %v681_v28  ;;  %v1288_v52 = vmul.f32 %v3606_v2, %v680_v44  ;;  %v651_v40 = vmul.f32 %v554_v16, %v3607_v39  ;;  %v3611_v44 = vld [vmem:[#allocation23_spill] sm:$0xff]  ;;  %v3613_v2 = vld [vmem:[#allocation24_spill] sm:$0xff]  ;;  %v3030_v39 = vld [vmem:[%s2057_s23 + $0xd8] sm:$0xff] }
  0xb5   : > { %v650_v18 = vmul.f32 %v549_v11, %v3608_v53  ;;  %v1449_v33 = vsel %vm1417_vm0, %v1318_v0, 0.0  ;;  %v1531_v58 = vsel %vm1503_vm5, %v1448_v59, 0.0  ;;  %v1450_v5 = vsel %vm1418_vm1, %v1319_v60, 0.0 }
  0xb6   : > { %v876_v7 = vmul.f32 1.442695, %v2924_v56  ;;  %v683_v47 = vadd.f32 1.0, %v651_v40  ;;  %v1534_v15 = vsel %vm1503_vm5, %v1449_v33, 0.0  ;;  %v1320_v13 = vadd.f32 %v1288_v52, %v3609_v42  ;;  %1532 = vadd.xlane.f32.xlu0 %v1531_v58  ;;  %v564_v37 = vpop.permute.xlu1 %563  ;;  %v559_v62 = vpop.permute.xlu0 %558  ;;  %v3619_v42 = vld [vmem:[#allocation35_spill] sm:$0xff]  ;;  %v3628_v58 = vld [vmem:[#allocation45_spill] sm:$0xff] }
  0xb7   : > { %v682_v21 = vadd.f32 1.0, %v650_v18  ;;  %vm1423_vm8 = vcmp.lt.s32.totalorder %v2783_v14, 318  ;;  %1535 = vadd.xlane.f32.xlu1 %v1534_v15  ;;  %v1321_v31 = vadd.f32 %v1289_v26, %v3610_v34  ;;  %v1094_v59 = vadd.f32 1.0, %v1093_v61  ;;  %v3620_v34 = vld [vmem:[#allocation30_spill] sm:$0xff]  ;;  %v3627_v14 = vld [vmem:[#allocation37_spill] sm:$0xff] }
  0xb8   : > { %v1096_v57 = vand.u32 2147483647, %v2921_v12  ;;  %vm1424_vm9 = vcmp.lt.s32.totalorder %v2866_v23, 318  ;;  %1933 = vpow2.f32 %v876_v7  ;;  %v1291_v56 = vmul.f32 %v2751_v55, %v683_v47 }
  0xb9   : > { %v1290_v28 = vmul.f32 %v2776_v4, %v682_v21  ;;  %v653_v25 = vmul.f32 %v564_v37, %v3611_v44  ;;  %v652_v0 = vmul.f32 %v559_v62, %v3612_v20  ;;  %v1930_v16 = vpop.eup %1929  ;;  %v1451_v11 = vsel %vm1419_vm2, %v1320_v13, 0.0  ;;  %v3618_v21 = vld [vmem:[#allocation32_spill] sm:$0xff]  ;;  %v3624_v44 = vld [vmem:[#allocation27_spill] sm:$0xff] }
  0xba   : > { %v1537_v8 = vsel %vm1503_vm5, %v1450_v5, 0.0  ;;  %v1452_v60 = vsel %vm1420_vm3, %v1321_v31, 0.0  ;;  %v3024_v61 = vmul.f32 %v2894_v35, %v1103_v48  ;;  %v1540_v4 = vsel %vm1503_vm5, %v1451_v11, 0.0  ;;  %v574_v40 = vpop.permute.xlu1 %573  ;;  %v569_v53 = vpop.permute.xlu0 %568  ;;  %v3614_v48 = vld [vmem:[#allocation21_spill] sm:$0xff]  ;;  %v3617_v5 = vld [vmem:[#allocation46_spill] sm:$0xff] }
  0xbb   : > { %v685_v26 = vadd.f32 1.0, %v653_v25  ;;  %v684_v55 = vadd.f32 1.0, %v652_v0  ;;  %v1322_v52 = vadd.f32 %v1290_v28, %v3613_v2  ;;  %vm1425_vm10 = vcmp.lt.s32.totalorder %v2840_v41, 318  ;;  %v1932_v24 = vpop.eup %1931  ;;  %1541 = vadd.xlane.f32.xlu1 %v1540_v4  ;;  %1538 = vadd.xlane.f32.xlu0 %v1537_v8  ;;  %v3630_v41 = vld [vmem:[#allocation42_spill] sm:$0xff] }
  0xbc   : > { %v1080_v17 = vsel %vm2981_vm4, %v2879_v51, %v2994_v3  ;;  %v1323_v18 = vadd.f32 %v1291_v56, %v3614_v48  ;;  %v1095_v33 = vmul.f32 %v2921_v12, %v1094_v59  ;;  %vm3038_vm11 = vcmp.lt.f32.partialorder %v1096_v57, 0.0004427343  ;;  %v3623_v56 = vld [vmem:[#allocation44_spill] sm:$0xff] }
  0xbd   : > { %v1293_v7 = vmul.f32 %v3617_v5, %v685_v26  ;;  %v1292_v47 = vmul.f32 %v2829_v45, %v684_v55  ;;  %v655_v15 = vmul.f32 %v574_v40, %v3618_v21  ;;  %v654_v13 = vmul.f32 %v569_v53, %v3619_v42  ;;  %v3629_v42 = vld [vmem:[#allocation43_spill] sm:$0xff] }
  0xbe   : > { %v1453_v1 = vsel %vm1421_vm6, %v1322_v52, 0.0  ;;  %v1543_v51 = vsel %vm1503_vm5, %v1452_v60, 0.0  ;;  %v1092_v3 = vmul.f32 0.6931472, %v1930_v16  ;;  %v791_v12 = vand.u32 2147483647, %v3030_v39  ;;  %v579_v57 = vpop.permute.xlu0 %578  ;;  %v584_v0 = vpop.permute.xlu1 %583 }
  0xbf   : > { %v686_v37 = vadd.f32 1.0, %v654_v13  ;;  %v1546_v62 = vsel %vm1503_vm5, %v1453_v1, 0.0  ;;  %v1324_v31 = vadd.f32 %v1292_v47, %v3620_v34  ;;  %v1454_v45 = vsel %vm1422_vm7, %v1323_v18, 0.0  ;;  %1544 = vadd.xlane.f32.xlu0 %v1543_v51  ;;  %v3625_v16 = vld [vmem:[#allocation39_spill] sm:$0xff]  ;;  %v3626_v52 = vld [vmem:[#allocation38_spill] sm:$0xff]  ;;  %v3091_v1 = vld [vmem:[%s2057_s23 + $0xd0] sm:$0xff] }
  0xc0   : > { %vm3056_vm12 = vcmp.lt.f32.partialorder %v1105_v9, 0.0004427343  ;;  %vm1427_vm14 = vcmp.lt.s32.totalorder %v2927_v63, 318  ;;  %v687_v50 = vadd.f32 1.0, %v655_v15  ;;  %1547 = vadd.xlane.f32.xlu1 %v1546_v62  ;;  %v1264_v28 = vadd.f32 %v3623_v56, %v1080_v17 }
  0xc1   : > { %v1325_v25 = vadd.f32 %v1293_v7, %v3624_v44  ;;  %v823_v20 = vsub.f32 0.0, %v791_v12  ;;  %v1294_v29 = vmul.f32 %v2942_v43, %v686_v37  ;;  %v656_v35 = vmul.f32 %v579_v57, %v3625_v16  ;;  %v3631_v12 = vld [vmem:[#allocation34_spill] sm:$0xff]  ;;  %v3633_v16 = vld [vmem:[#allocation49_spill] sm:$0xff] }
  0xc2   : > { %v1101_v9 = vmul.f32 0.6931472, %v1932_v24  ;;  %v1117_v11 = vadd.f32 1.0, %v2967_v6  ;;  %v3066_v8 = vpop.eup %1933  ;;  %v1455_v60 = vsel %vm1423_vm8, %v1324_v31, 0.0  ;;  %v1549_v26 = vsel %vm1503_vm5, %v1454_v45, 0.0  ;;  %v589_v48 = vpop.permute.xlu0 %588  ;;  %v3632_v31 = vld [vmem:[#allocation48_spill] sm:$0xff] }
  0xc3   : > { %v1098_v55 = vsel %vm3038_vm11, %v1095_v33, %v1092_v3  ;;  %v1394_v4 = vadd.s32 %v2204_v10, %v2930_v19  ;;  %v688_v43 = vadd.f32 1.0, %v656_v35  ;;  %v1552_v2 = vsel %vm1503_vm5, %v1455_v60, 0.0  ;;  %1550 = vadd.xlane.f32.xlu0 %v1549_v26  ;;  %v3100_v3 = vld [vmem:[%s2132_s26 + $0xc0] sm:$0xff] }
  0xc4   : > { %v1326_v24 = vadd.f32 %v1294_v29, %v3626_v52  ;;  %v1456_v40 = vsel %vm1424_vm9, %v1325_v25, 0.0  ;;  %v1295_v53 = vmul.f32 %v2876_v30, %v687_v50  ;;  %v657_v17 = vmul.f32 %v584_v0, %v3627_v14  ;;  %1553 = vadd.xlane.f32.xlu1 %v1552_v2  ;;  %v594_v29 = vpop.permute.xlu1 %593  ;;  %v3120_v0 = vld [vmem:[%s2057_s23 + $0xe8] sm:$0xff]  ;;  %v3634_v60 = vld [vmem:[#allocation50_spill] sm:$0xff] }
  0xc5   : > { %v1108_v18 = vadd.f32 1.0, %v3066_v8  ;;  %v882_v33 = vmul.f32 1.442695, %v823_v20  ;;  %v1296_v19 = vmul.f32 %v1264_v28, %v688_v43  ;;  %v658_v5 = vmul.f32 %v589_v48, %v3628_v58  ;;  %v3635_v52 = vld [vmem:[#allocation47_spill] sm:$0xff]  ;;  %v3638_v48 = vld [vmem:[#allocation41_spill] sm:$0xff] }
  0xc6   : > { %v1266_v7 = vadd.f32 %v2826_v32, %v1098_v55  ;;  %1935 = vlog2.f32 %v1117_v11  ;;  %v1457_v23 = vsel %vm1425_vm10, %v1326_v24, 0.0  ;;  %v1555_v30 = vsel %vm1503_vm5, %v1456_v40, 0.0  ;;  %v599_v57 = vpop.permute.xlu0 %598 }
  0xc7   : > { %1937 = vlog2.f32 %v1108_v18  ;;  %vm1426_vm15 = vcmp.lt.s32.totalorder %v1394_v4, 318  ;;  %v690_v47 = vadd.f32 1.0, %v658_v5  ;;  %v1558_v21 = vsel %vm1503_vm5, %v1457_v23, 0.0  ;;  %1556 = vadd.xlane.f32.xlu0 %v1555_v30 }
  0xc8   : > { %v1111_v15 = vmul.f32 -0.5, %v3066_v8  ;;  %v1328_v13 = vadd.f32 %v1296_v19, %v3629_v42  ;;  %v689_v51 = vadd.f32 1.0, %v657_v17  ;;  %v1265_v32 = vadd.f32 %v3630_v41, %v1089_v49  ;;  %1559 = vadd.xlane.f32.xlu1 %v1558_v21 }
  0xc9   : > { %v1327_v37 = vadd.f32 %v1295_v53, %v3631_v12  ;;  %1939 = vpow2.f32 %v882_v33  ;;  %v1298_v62 = vmul.f32 %v1266_v7, %v690_v47  ;;  %v1120_v34 = vmul.f32 -0.5, %v2967_v6  ;;  %v3146_v12 = vld [vmem:[%s2057_s23 + $0xe0] sm:$0xff] }
  0xca   : > { %v1205_v45 = vsub.f32 0.0, %v3632_v31  ;;  %v724_v50 = vsub.f32 1.0, %v3100_v3  ;;  %v1107_v36 = vsel %vm3056_vm12, %v3024_v61, %v1101_v9  ;;  %v1459_v38 = vsel %vm1427_vm14, %v1328_v13, 0.0 }
  0xcb   : > { %v1458_v27 = vsel %vm1426_vm15, %v1327_v37, 0.0  ;;  %v790_v49 = vand.u32 2147483647, %v3091_v1  ;;  %v1112_v56 = vadd.f32 1.0, %v1111_v15  ;;  %v1114_v28 = vand.u32 2147483647, %v3066_v8  ;;  %v604_v15 = vpop.permute.xlu1 %603 }
  0xcc   : > { %v1564_v44 = vsel %vm1503_vm5, %v1459_v38, 0.0  ;;  %v1561_v25 = vsel %vm1503_vm5, %v1458_v27, 0.0  ;;  %v1297_v20 = vmul.f32 %v1265_v32, %v689_v51  ;;  %v1236_v61 = vmax.f32 %v1204_v22, 0.0 }
  0xcd   : > { %1565 = vadd.xlane.f32.xlu1 %v1564_v44  ;;  %1562 = vadd.xlane.f32.xlu0 %v1561_v25  ;;  %v822_v63 = vsub.f32 0.0, %v790_v49  ;;  %v1364_v59 = vadd.s32 176, %v2172_v54  ;;  %v1267_v35 = vadd.f32 %v3633_v16, %v1107_v36  ;;  %v1121_v9 = vadd.f32 1.0, %v1120_v34  ;;  %v3641_v34 = vld [vmem:[#allocation40_spill] sm:$0xff]  ;;  %v3643_v44 = vld [vmem:[#allocation51_spill] sm:$0xff] }
  0xce   : > { %v1123_v11 = vand.u32 2147483647, %v2967_v6  ;;  %v1330_v26 = vadd.f32 %v1298_v62, %v3634_v60  ;;  %v660_v55 = vmul.f32 %v599_v57, %v3100_v3  ;;  %v1363_v22 = vadd.s32 168, %v2172_v54 }
  0xcf   : > { %v880_v4 = vmul.f32 1.442695, %v822_v63  ;;  %v1397_v43 = vadd.s32 %v2204_v10, %v1364_v59  ;;  %v659_v24 = vmul.f32 %v594_v29, %v3635_v52  ;;  %v1113_v40 = vmul.f32 %v3066_v8, %v1112_v56  ;;  %v407_v63 = vld [vmem:[%s2132_s26 + $0xd8] sm:$0xff] }
  0xd0   : > { %v1936_v2 = vpop.eup %1935  ;;  %vm3130_vm13 = vcmp.lt.f32.partialorder %v1114_v28, 0.0004427343  ;;  %v793_v14 = vand.u32 2147483647, %v3120_v0  ;;  %v1329_v18 = vadd.f32 %v1297_v20, %v3638_v48  ;;  %v1396_v33 = vadd.s32 %v2204_v10, %v1363_v22  ;;  %v609_v48 = vpop.permute.xlu0 %608 }
  0xd1   : > { %v1938_v17 = vpop.eup %1937  ;;  %1941 = vpow2.f32 %v880_v4  ;;  %vm1429_vm0 = vcmp.lt.s32.totalorder %v1397_v43, 318  ;;  %v1122_v19 = vmul.f32 %v2967_v6, %v1121_v9  ;;  %vm3138_vm1 = vcmp.lt.f32.partialorder %v1123_v11, 0.0004427343 }
  0xd2   : > { %v1110_v8 = vmul.f32 0.6931472, %v1938_v17  ;;  %v1461_v5 = vsel %vm1429_vm0, %v1330_v26, 0.0  ;;  %v692_v23 = vadd.f32 1.0, %v660_v55  ;;  %vm1428_vm2 = vcmp.lt.s32.totalorder %v1396_v33, 318 }
  0xd3   : > { %v1940_v7 = vpop.eup %1939  ;;  %v1570_v30 = vsel %vm1503_vm5, %v1461_v5, 0.0  ;;  %v825_v47 = vsub.f32 0.0, %v793_v14  ;;  %v691_v21 = vadd.f32 1.0, %v659_v24  ;;  %v1119_v42 = vmul.f32 0.6931472, %v1936_v2 }
  0xd4   : > { %v1116_v13 = vsel %vm3130_vm13, %v1113_v40, %v1110_v8  ;;  %v1135_v6 = vadd.f32 1.0, %v1940_v7  ;;  %1571 = vadd.xlane.f32.xlu1 %v1570_v30  ;;  %v1138_v41 = vmul.f32 -0.5, %v1940_v7  ;;  %v1460_v32 = vsel %vm1428_vm2, %v1329_v18, 0.0  ;;  %v406_v18 = vld [vmem:[%s2132_s26 + $0xd0] sm:$0xff] }
  0xd5   : > { %v1268_v51 = vadd.f32 %v1236_v61, %v1116_v13  ;;  %v886_v3 = vmul.f32 1.442695, %v825_v47  ;;  %v756_v37 = vmul.f32 %v724_v50, %v2873_v46  ;;  %v1567_v62 = vsel %vm1503_vm5, %v1460_v32, 0.0  ;;  %v3158_v50 = vld [vmem:[%s2057_s23 + $0xf8] sm:$0xff]  ;;  %v614_v61 = vpop.permute.xlu1 %613  ;;  %v3183_v30 = vld [vmem:[%s2057_s23 + $0xf0] sm:$0xff] }
  0xd6   : > { %1943 = vlog2.f32 %v1135_v6  ;;  %v3642_v36 = vsub.f32 1.0, %v3635_v52  ;;  %v1237_v27 = vmax.f32 %v1205_v45, 0.0  ;;  %1568 = vadd.xlane.f32.xlu0 %v1567_v62  ;;  %v1299_v57 = vmul.f32 %v1267_v35, %v691_v21 }
  0xd7   : > { %v1300_v49 = vmul.f32 %v1268_v51, %v692_v23  ;;  %1945 = vpow2.f32 %v886_v3  ;;  %v1125_v56 = vsel %vm3138_vm1, %v1122_v19, %v1119_v42  ;;  %v792_v28 = vand.u32 2147483647, %v3146_v12 }
  0xd8   : > { %v755_v38 = vmul.f32 %v3642_v36, %v3641_v34  ;;  %v1366_v46 = vadd.s32 192, %v2172_v54  ;;  %v661_v25 = vmul.f32 %v604_v15, %v3643_v44  ;;  %v3644_v20 = vsub.f32 1.0, %v3643_v44 }
  0xd9   : > { %v1139_v45 = vadd.f32 1.0, %v1138_v41  ;;  %v824_v59 = vsub.f32 0.0, %v792_v28  ;;  %v1332_v16 = vadd.f32 %v1300_v49, %v756_v37  ;;  %v1365_v9 = vadd.s32 184, %v2172_v54 }
  0xda   : > { %v3164_v29 = vmul.f32 %v3644_v20, %v3632_v31  ;;  %v1399_v35 = vadd.s32 %v2204_v10, %v1366_v46  ;;  %v1269_v60 = vadd.f32 %v1237_v27, %v1125_v56  ;;  %v727_v26 = vsub.f32 1.0, %v407_v63  ;;  %v3197_v56 = vld [vmem:[%s2132_s26 + $0xe8] sm:$0xff] }
  0xdb   : > { %v3169_v11 = vpop.eup %1941  ;;  %v1207_v55 = vsub.f32 0.0, %v3030_v39  ;;  %v795_v4 = vand.u32 2147483647, %v3158_v50  ;;  %v1141_v31 = vand.u32 2147483647, %v1940_v7  ;;  %v1331_v2 = vadd.f32 %v1299_v57, %v755_v38  ;;  %v624_v57 = vpop.permute.xlu1 %623 }
  0xdc   : > { %v1126_v43 = vadd.f32 1.0, %v3169_v11  ;;  %v884_v22 = vmul.f32 1.442695, %v824_v59  ;;  %v693_v52 = vadd.f32 1.0, %v661_v25  ;;  %v663_v24 = vmul.f32 %v614_v61, %v407_v63 }
  0xdd   : > { %vm1431_vm3 = vcmp.lt.s32.totalorder %v1399_v35, 318  ;;  %v1398_v40 = vadd.s32 %v2204_v10, %v1365_v9  ;;  %v1140_v53 = vmul.f32 %v1940_v7, %v1139_v45  ;;  %v1129_v14 = vmul.f32 -0.5, %v3169_v11 }
  0xde   : > { %1947 = vlog2.f32 %v1126_v43  ;;  %v1463_v17 = vsel %vm1431_vm3, %v1332_v16, 0.0  ;;  %v827_v19 = vsub.f32 0.0, %v795_v4  ;;  %vm3178_vm6 = vcmp.lt.f32.partialorder %v1141_v31, 0.0004427343 }
  0xdf   : > { %1949 = vpow2.f32 %v884_v22  ;;  %v1576_v33 = vsel %vm1503_vm5, %v1463_v17, 0.0  ;;  %vm1430_vm4 = vcmp.lt.s32.totalorder %v1398_v40, 318  ;;  %v1239_v5 = vmax.f32 %v1207_v55, 0.0 }
  0xe0   : > { %v1944_v58 = vpop.eup %1943  ;;  %v726_v23 = vsub.f32 1.0, %v406_v18  ;;  %1577 = vadd.xlane.f32.xlu1 %v1576_v33  ;;  %v1462_v7 = vsel %vm1430_vm4, %v1331_v2, 0.0  ;;  %v1206_v15 = vsub.f32 0.0, %v3091_v1  ;;  %v890_v13 = vmul.f32 1.442695, %v827_v19 }
  0xe1   : > { %v3185_v47 = vpop.eup %1945  ;;  %v1137_v21 = vmul.f32 0.6931472, %v1944_v58  ;;  %v1573_v42 = vsel %vm1503_vm5, %v1462_v7, 0.0  ;;  %v695_v6 = vadd.f32 1.0, %v663_v24  ;;  %v662_v51 = vmul.f32 %v609_v48, %v406_v18 }
  0xe2   : > { %v1130_v41 = vadd.f32 1.0, %v1129_v14  ;;  %v1153_v32 = vadd.f32 1.0, %v3185_v47  ;;  %1574 = vadd.xlane.f32.xlu0 %v1573_v42  ;;  %v1301_v3 = vmul.f32 %v1269_v60, %v693_v52  ;;  %1951 = vpow2.f32 %v890_v13  ;;  %v3241_v42 = vld [vmem:[%s2132_s26 + $0xe0] sm:$0xff] }
  0xe3   : > { %v1143_v37 = vsel %vm3178_vm6, %v1140_v53, %v1137_v21  ;;  %v794_v62 = vand.u32 2147483647, %v3183_v30  ;;  %v759_v34 = vmul.f32 %v727_v26, %v3030_v39  ;;  %v1132_v38 = vand.u32 2147483647, %v3169_v11 }
  0xe4   : > { %v1271_v36 = vadd.f32 %v1239_v5, %v1143_v37  ;;  %1953 = vlog2.f32 %v1153_v32  ;;  %v758_v27 = vmul.f32 %v726_v23, %v3091_v1  ;;  %v1238_v49 = vmax.f32 %v1206_v15, 0.0  ;;  %v619_v15 = vpop.permute.xlu0 %618 }
  0xe5   : > { %v1156_v28 = vmul.f32 -0.5, %v3185_v47  ;;  %v826_v46 = vsub.f32 0.0, %v794_v62  ;;  %v694_v25 = vadd.f32 1.0, %v662_v51  ;;  %v1131_v20 = vmul.f32 %v3169_v11, %v1130_v41 }
  0xe6   : > { %v1303_v44 = vmul.f32 %v1271_v36, %v695_v6  ;;  %v1367_v45 = vadd.s32 200, %v2172_v54  ;;  %v1368_v61 = vadd.s32 208, %v2172_v54  ;;  %v1333_v63 = vadd.f32 %v1301_v3, %v3164_v29 }
  0xe7   : > { %v888_v39 = vmul.f32 1.442695, %v826_v46  ;;  %v1369_v1 = vadd.s32 216, %v2172_v54  ;;  %vm3206_vm7 = vcmp.lt.f32.partialorder %v1132_v38, 0.0004427343  ;;  %v665_v35 = vmul.f32 %v624_v57, %v3197_v56 }
  0xe8   : > { %v1948_v59 = vpop.eup %1947  ;;  %v1209_v9 = vsub.f32 0.0, %v3120_v0  ;;  %v1400_v11 = vadd.s32 %v2204_v10, %v1367_v45  ;;  %v1157_v55 = vadd.f32 1.0, %v1156_v28  ;;  %v1159_v4 = vand.u32 2147483647, %v3185_v47  ;;  %v411_v45 = vld [vmem:[%s2132_s26 + $0xf8] sm:$0xff] }
  0xe9   : > { %v3213_v60 = vpop.eup %1949  ;;  %v1128_v26 = vmul.f32 0.6931472, %v1948_v59  ;;  %1955 = vpow2.f32 %v888_v39  ;;  %v1402_v29 = vadd.s32 %v2204_v10, %v1369_v1  ;;  %v1335_v43 = vadd.f32 %v1303_v44, %v759_v34 }
  0xea   : > { %v1144_v31 = vadd.f32 1.0, %v3213_v60  ;;  %vm1432_vm8 = vcmp.lt.s32.totalorder %v1400_v11, 318  ;;  %v1401_v2 = vadd.s32 %v2204_v10, %v1368_v61  ;;  %v729_v40 = vsub.f32 1.0, %v3197_v56 }
  0xeb   : > { %v1134_v22 = vsel %vm3206_vm7, %v1131_v20, %v1128_v26  ;;  %v1464_v52 = vsel %vm1432_vm8, %v1333_v63, 0.0  ;;  %vm1434_vm9 = vcmp.lt.s32.totalorder %v1402_v29, 318  ;;  %v1147_v53 = vmul.f32 -0.5, %v3213_v60  ;;  %v634_v20 = vpop.permute.xlu1 %633 }
  0xec   : > { %v1270_v24 = vadd.f32 %v1238_v49, %v1134_v22  ;;  %1957 = vlog2.f32 %v1144_v31  ;;  %v3228_v14 = vpop.eup %1951  ;;  %v1158_v17 = vmul.f32 %v3185_v47, %v1157_v55  ;;  %v1241_v48 = vmax.f32 %v1209_v9, 0.0 }
  0xed   : > { %v1579_v18 = vsel %vm1503_vm5, %v1464_v52, 0.0  ;;  %v1371_v33 = vadd.s32 232, %v2172_v54  ;;  %vm3233_vm10 = vcmp.lt.f32.partialorder %v1159_v4, 0.0004427343  ;;  %v1171_v5 = vadd.f32 1.0, %v3228_v14 }
  0xee   : > { %v1954_v19 = vpop.eup %1953  ;;  %v1302_v58 = vmul.f32 %v1270_v24, %v694_v25  ;;  %1580 = vadd.xlane.f32.xlu0 %v1579_v18  ;;  %v1466_v23 = vsel %vm1434_vm9, %v1335_v43, 0.0  ;;  %v697_v7 = vadd.f32 1.0, %v665_v35  ;;  %v1208_v47 = vsub.f32 0.0, %v3146_v12 }
  0xef   : > { %v1155_v21 = vmul.f32 0.6931472, %v1954_v19  ;;  %vm1433_vm11 = vcmp.lt.s32.totalorder %v1401_v2, 318  ;;  %v1148_v13 = vadd.f32 1.0, %v1147_v53  ;;  %1959 = vlog2.f32 %v1171_v5  ;;  %v629_v53 = vpop.permute.xlu0 %628 }
  0xf0   : > { %v1174_v6 = vmul.f32 -0.5, %v3228_v14  ;;  %v1334_v51 = vadd.f32 %v1302_v58, %v758_v27  ;;  %v1585_v32 = vsel %vm1503_vm5, %v1466_v23, 0.0  ;;  %v3248_v3 = vadd.s32 %v2204_v10, %v1371_v33 }
  0xf1   : > { %v1161_v41 = vsel %vm3233_vm10, %v1158_v17, %v1155_v21  ;;  %vm315_vm12 = vcmask 7168   ;;  %v761_v37 = vmul.f32 %v729_v40, %v3120_v0  ;;  %v1150_v34 = vand.u32 2147483647, %v3213_v60  ;;  %v410_v17 = vld [vmem:[%s2132_s26 + $0xf0] sm:$0xff] }
  0xf2   : > { %v1273_v62 = vadd.f32 %v1241_v48, %v1161_v41  ;;  %v1465_v36 = vsel %vm1433_vm11, %v1334_v51, 0.0  ;;  %1586 = vadd.xlane.f32.xlu0 %v1585_v32  ;;  %v664_v27 = vmul.f32 %v619_v15, %v3241_v42  ;;  %v728_v49 = vsub.f32 1.0, %v3241_v42 }
  0xf3   : > { %v3257_v38 = vpop.eup %1955  ;;  %v1582_v0 = vsel %vm1503_vm5, %v1465_v36, 0.0  ;;  %v1240_v56 = vmax.f32 %v1208_v47, 0.0  ;;  %v1370_v46 = vadd.s32 224, %v2172_v54  ;;  %v1995_v44 = vmov 0.0  }
  0xf4   : > { %v1305_v57 = vmul.f32 %v1273_v62, %v697_v7  ;;  %v1162_v28 = vadd.f32 1.0, %v3257_v38  ;;  %1583 = vadd.xlane.f32.xlu1 %v1582_v0  ;;  %316 = vst.msk [vmem:[%s3253_s4] sm:$0xff] %vm315_vm12, %v1995_v44  ;;  %317 = vst.msk [vmem:[%s3253_s4 + $0x8] sm:$0xff] %vm315_vm12, %v1995_v44  ;;  %v1149_v25 = vmul.f32 %v3213_v60, %v1148_v13  ;;  %v1175_v39 = vadd.f32 1.0, %v1174_v6 }
  0xf5   : > { %318 = vst.msk [vmem:[%s3253_s4 + $0x10] sm:$0xff] %vm315_vm12, %v1995_v44  ;;  %319 = vst.msk [vmem:[%s3253_s4 + $0x18] sm:$0xff] %vm315_vm12, %v1995_v44  ;;  %v1211_v61 = vsub.f32 0.0, %v3158_v50  ;;  %vm1436_vm14 = vcmp.lt.s32.totalorder %v3248_v3, 318  ;;  %vm3332_vm15 = vcmp.lt.f32.partialorder %v1150_v34, 0.0004427343  ;;  %v760_v60 = vmul.f32 %v728_v49, %v3146_v12 }
  0xf6   : > { %320 = vst.msk [vmem:[%s3253_s4 + $0x20] sm:$0xff] %vm315_vm12, %v1995_v44  ;;  %321 = vst.msk [vmem:[%s3253_s4 + $0x28] sm:$0xff] %vm315_vm12, %v1995_v44  ;;  %v1958_v63 = vpop.eup %1957  ;;  %v1177_v59 = vand.u32 2147483647, %v3228_v14  ;;  %1961 = vlog2.f32 %v1162_v28  ;;  %v1337_v16 = vadd.f32 %v1305_v57, %v761_v37  ;;  %v696_v35 = vadd.f32 1.0, %v664_v27 }
  0xf7   : > { %322 = vst.msk [vmem:[%s3253_s4 + $0x30] sm:$0xff] %vm315_vm12, %v1995_v44  ;;  %323 = vst.msk [vmem:[%s3253_s4 + $0x38] sm:$0xff] %vm315_vm12, %v1995_v44  ;;  %v1146_v9 = vmul.f32 0.6931472, %v1958_v63  ;;  %v1165_v11 = vmul.f32 -0.5, %v3257_v38  ;;  %v667_v26 = vmul.f32 %v634_v20, %v411_v45  ;;  %v1403_v55 = vadd.s32 %v2204_v10, %v1370_v46 }
  0xf8   : > { %324 = vst.msk [vmem:[%s3253_s4 + $0x40] sm:$0xff] %vm315_vm12, %v1995_v44  ;;  %325 = vst.msk [vmem:[%s3253_s4 + $0x48] sm:$0xff] %vm315_vm12, %v1995_v44  ;;  %v1468_v29 = vsel %vm1436_vm14, %v1337_v16, 0.0  ;;  %v1176_v31 = vmul.f32 %v3228_v14, %v1175_v39  ;;  %v1373_v22 = vadd.s32 248, %v2172_v54  ;;  %v731_v24 = vsub.f32 1.0, %v411_v45 }
  0xf9   : > { %326 = vst.msk [vmem:[%s3253_s4 + $0x50] sm:$0xff] %vm315_vm12, %v1995_v44  ;;  %327 = vst.msk [vmem:[%s3253_s4 + $0x58] sm:$0xff] %vm315_vm12, %v1995_v44  ;;  %v1152_v4 = vsel %vm3332_vm15, %v1149_v25, %v1146_v9  ;;  %v1591_v43 = vsel %vm1503_vm5, %v1468_v29, 0.0  ;;  %v1960_v2 = vpop.eup %1959  ;;  %vm1178_vm13 = vcmp.lt.f32.partialorder %v1177_v59, 0.0004427343  ;;  %v1243_v40 = vmax.f32 %v1211_v61, 0.0 }
  0xfa   : > { %328 = vst.msk [vmem:[%s3253_s4 + $0x60] sm:$0xff] %vm315_vm12, %v1995_v44  ;;  %329 = vst.msk [vmem:[%s3253_s4 + $0x68] sm:$0xff] %vm315_vm12, %v1995_v44  ;;  %v1272_v52 = vadd.f32 %v1240_v56, %v1152_v4  ;;  %1592 = vadd.xlane.f32.xlu0 %v1591_v43  ;;  %v1173_v12 = vmul.f32 0.6931472, %v1960_v2  ;;  %v1166_v48 = vadd.f32 1.0, %v1165_v11  ;;  %v699_v33 = vadd.f32 1.0, %v667_v26 }
  0xfb   : > { %330 = vst.msk [vmem:[%s3253_s4 + $0x70] sm:$0xff] %vm315_vm12, %v1995_v44  ;;  %331 = vst.msk [vmem:[%s3253_s4 + $0x78] sm:$0xff] %vm315_vm12, %v1995_v44  ;;  %v1168_v19 = vand.u32 2147483647, %v3257_v38  ;;  %v1210_v14 = vsub.f32 0.0, %v3183_v30  ;;  %vm1435_vm0 = vcmp.lt.s32.totalorder %v1403_v55, 318  ;;  %v1406_v8 = vadd.s32 %v2204_v10, %v1373_v22 }
  0xfc   : > { %332 = vst.msk [vmem:[%s3253_s4 + $0x80] sm:$0xff] %vm315_vm12, %v1995_v44  ;;  %333 = vst.msk [vmem:[%s3253_s4 + $0x88] sm:$0xff] %vm315_vm12, %v1995_v44  ;;  %v1304_v18 = vmul.f32 %v1272_v52, %v696_v35  ;;  %v1179_v58 = vsel %vm1178_vm13, %v1176_v31, %v1173_v12  ;;  %v763_v5 = vmul.f32 %v731_v24, %v3158_v50  ;;  %v730_v47 = vsub.f32 1.0, %v410_v17  ;;  %v1472_v46 = vld [vmem:[%s3253_s4 + $0x8] sm:$0xff]  ;;  %v1474_v63 = vld [vmem:[%s3253_s4 + $0x18] sm:$0xff] }
  0xfd   : > { %334 = vst.msk [vmem:[%s3253_s4 + $0x90] sm:$0xff] %vm315_vm12, %v1995_v44  ;;  %335 = vst.msk [vmem:[%s3253_s4 + $0x98] sm:$0xff] %vm315_vm12, %v1995_v44  ;;  %v1275_v23 = vadd.f32 %v1243_v40, %v1179_v58  ;;  %v666_v7 = vmul.f32 %v629_v53, %v410_v17  ;;  %v1167_v15 = vmul.f32 %v3257_v38, %v1166_v48  ;;  %v1372_v42 = vadd.s32 240, %v2172_v54  ;;  %v1475_v61 = vld [vmem:[%s3253_s4 + $0x20] sm:$0xff]  ;;  %v1476_v11 = vld [vmem:[%s3253_s4 + $0x28] sm:$0xff] }
  0xfe   : > { %336 = vst.msk [vmem:[%s3253_s4 + $0xa0] sm:$0xff] %vm315_vm12, %v1995_v44  ;;  %337 = vst.msk [vmem:[%s3253_s4 + $0xa8] sm:$0xff] %vm315_vm12, %v1995_v44  ;;  %v1336_v21 = vadd.f32 %v1304_v18, %v760_v60  ;;  %vm1169_vm1 = vcmp.lt.f32.partialorder %v1168_v19, 0.0004427343  ;;  %v1242_v51 = vmax.f32 %v1210_v14, 0.0  ;;  %vm1438_vm2 = vcmp.lt.s32.totalorder %v1406_v8, 318 }
  0xff   : > { %338 = vst.msk [vmem:[%s3253_s4 + $0xb0] sm:$0xff] %vm315_vm12, %v1995_v44  ;;  %339 = vst.msk [vmem:[%s3253_s4 + $0xb8] sm:$0xff] %vm315_vm12, %v1995_v44  ;;  %v1307_v6 = vmul.f32 %v1275_v23, %v699_v33  ;;  %v698_v37 = vadd.f32 1.0, %v666_v7  ;;  %v1405_v34 = vadd.s32 %v2204_v10, %v1372_v42  ;;  %v762_v54 = vmul.f32 %v730_v47, %v3183_v30  ;;  %v1471_v10 = vld [vmem:[%s3253_s4] sm:$0xff]  ;;  %v1477_v9 = vld [vmem:[%s3253_s4 + $0x30] sm:$0xff] }
 0x100   : > { %340 = vst.msk [vmem:[%s3253_s4 + $0xc0] sm:$0xff] %vm315_vm12, %v1995_v44  ;;  %341 = vst.msk [vmem:[%s3253_s4 + $0xc8] sm:$0xff] %vm315_vm12, %v1995_v44  ;;  %v1962_v13 = vpop.eup %1961  ;;  %v1467_v41 = vsel %vm1435_vm0, %v1336_v21, 0.0  ;;  %v1479_v4 = vld [vmem:[%s3253_s4 + $0x40] sm:$0xff]  ;;  %v1478_v31 = vld [vmem:[%s3253_s4 + $0x38] sm:$0xff] }
 0x101   : > { %342 = vst.msk [vmem:[%s3253_s4 + $0xd0] sm:$0xff] %vm315_vm12, %v1995_v44  ;;  %343 = vst.msk [vmem:[%s3253_s4 + $0xd8] sm:$0xff] %vm315_vm12, %v1995_v44  ;;  %v1164_v32 = vmul.f32 0.6931472, %v1962_v13  ;;  %v1588_v3 = vsel %vm1503_vm5, %v1467_v41, 0.0  ;;  %v1339_v50 = vadd.f32 %v1307_v6, %v763_v5  ;;  %vm1437_vm3 = vcmp.lt.s32.totalorder %v1405_v34, 318 }
 0x102   : > { %344 = vst.msk [vmem:[%s3253_s4 + $0xe0] sm:$0xff] %vm315_vm12, %v1995_v44  ;;  %345 = vst.msk [vmem:[%s3253_s4 + $0xe8] sm:$0xff] %vm315_vm12, %v1995_v44  ;;  %1589 = vadd.xlane.f32.xlu1 %v1588_v3  ;;  %v1481_v24 = vld [vmem:[%s3253_s4 + $0x50] sm:$0xff]  ;;  %v1480_v40 = vld [vmem:[%s3253_s4 + $0x48] sm:$0xff] }
 0x103   : > { %346 = vst.msk [vmem:[%s3253_s4 + $0xf0] sm:$0xff] %vm315_vm12, %v1995_v44  ;;  %347 = vst.msk [vmem:[%s3253_s4 + $0xf8] sm:$0xff] %vm315_vm12, %v1995_v44  ;;  %v1170_v62 = vsel %vm1169_vm1, %v1167_v15, %v1164_v32  ;;  %v1470_v38 = vsel %vm1438_vm2, %v1339_v50, 0.0  ;;  %v1473_v44 = vld [vmem:[%s3253_s4 + $0x10] sm:$0xff]  ;;  %v1483_v18 = vld [vmem:[%s3253_s4 + $0x60] sm:$0xff] }
 0x104   : > { %v1274_v36 = vadd.f32 %v1242_v51, %v1170_v62  ;;  %v1597_v27 = vsel %vm1503_vm5, %v1470_v38, 0.0  ;;  %v1482_v33 = vld [vmem:[%s3253_s4 + $0x58] sm:$0xff]  ;;  %v1485_v5 = vld [vmem:[%s3253_s4 + $0x70] sm:$0xff]  ;;  %v1484_v23 = vld [vmem:[%s3253_s4 + $0x68] sm:$0xff] }
 0x105   : > { %1598 = vadd.xlane.f32.xlu0 %v1597_v27  ;;  %v1487_v42 = vld [vmem:[%s3253_s4 + $0x80] sm:$0xff]  ;;  %v1486_v13 = vld [vmem:[%s3253_s4 + $0x78] sm:$0xff]  ;;  %v1489_v3 = vld [vmem:[%s3253_s4 + $0x90] sm:$0xff] }
 0x106   : > { %v1306_v49 = vmul.f32 %v1274_v36, %v698_v37  ;;  %v1488_v37 = vld [vmem:[%s3253_s4 + $0x88] sm:$0xff]  ;;  %v1491_v36 = vld [vmem:[%s3253_s4 + $0xa0] sm:$0xff]  ;;  %v1490_v38 = vld [vmem:[%s3253_s4 + $0x98] sm:$0xff] }
 0x108   : > { %v1338_v0 = vadd.f32 %v1306_v49, %v762_v54 }
 0x10a   : > { %v1469_v57 = vsel %vm1437_vm3, %v1338_v0, 0.0 }
 0x10b   : > { %v1594_v56 = vsel %vm1503_vm5, %v1469_v57, 0.0 }
 0x10c   : > { %1595 = vadd.xlane.f32.xlu1 %v1594_v56  ;;  %v1493_v56 = vld [vmem:[%s3253_s4 + $0xb0] sm:$0xff] }
 0x12f   : > { %v1506_v28 = vpop.xlane.xlu0 %1505 }
 0x130   : > { %v1600_v30 = vadd.f32 %v1506_v28, %v1471_v10 }
 0x132   : > { %1633 = vst.msk [vmem:[%s3253_s4] sm:$0xff] %vm315_vm12, %v1600_v30  ;;  %v1492_v30 = vld [vmem:[%s3253_s4 + $0xa8] sm:$0xff] }
 0x133   : > { %v1509_v25 = vpop.xlane.xlu1 %1508  ;;  %v1512_v20 = vpop.xlane.xlu0 %1511 }
 0x134   : > { %v1601_v45 = vadd.f32 %v1509_v25, %v1472_v46  ;;  %v1602_v39 = vadd.f32 %v1512_v20, %v1473_v44  ;;  %v1495_v25 = vld [vmem:[%s3253_s4 + $0xc0] sm:$0xff] }
 0x136   : > { %1634 = vst.msk [vmem:[%s3253_s4 + $0x8] sm:$0xff] %vm315_vm12, %v1601_v45  ;;  %1635 = vst.msk [vmem:[%s3253_s4 + $0x10] sm:$0xff] %vm315_vm12, %v1602_v39  ;;  %v1494_v45 = vld [vmem:[%s3253_s4 + $0xb8] sm:$0xff] }
 0x137   : > { %v1518_v1 = vpop.xlane.xlu1 %1517  ;;  %v1515_v59 = vpop.xlane.xlu0 %1514 }
 0x138   : > { %v1604_v16 = vadd.f32 %v1518_v1, %v1475_v61  ;;  %v1603_v35 = vadd.f32 %v1515_v59, %v1474_v63  ;;  %v1496_v1 = vld [vmem:[%s3253_s4 + $0xc8] sm:$0xff] }
 0x13a   : > { %1637 = vst.msk [vmem:[%s3253_s4 + $0x20] sm:$0xff] %vm315_vm12, %v1604_v16  ;;  %1636 = vst.msk [vmem:[%s3253_s4 + $0x18] sm:$0xff] %vm315_vm12, %v1603_v35  ;;  %v1498_v35 = vld [vmem:[%s3253_s4 + $0xd8] sm:$0xff] }
 0x13b   : > { %v1524_v60 = vpop.xlane.xlu1 %1523  ;;  %v1521_v26 = vpop.xlane.xlu0 %1520 }
 0x13c   : > { %v1606_v55 = vadd.f32 %v1524_v60, %v1477_v9  ;;  %v1605_v29 = vadd.f32 %v1521_v26, %v1476_v11  ;;  %v1497_v9 = vld [vmem:[%s3253_s4 + $0xd0] sm:$0xff] }
 0x13e   : > { %1639 = vst.msk [vmem:[%s3253_s4 + $0x30] sm:$0xff] %vm315_vm12, %v1606_v55  ;;  %1638 = vst.msk [vmem:[%s3253_s4 + $0x28] sm:$0xff] %vm315_vm12, %v1605_v29  ;;  %v1500_v29 = vld [vmem:[%s3253_s4 + $0xe8] sm:$0xff] }
 0x13f   : > { %v1530_v43 = vpop.xlane.xlu1 %1529  ;;  %v1527_v22 = vpop.xlane.xlu0 %1526 }
 0x140   : > { %v1608_v2 = vadd.f32 %v1530_v43, %v1479_v4  ;;  %v1607_v52 = vadd.f32 %v1527_v22, %v1478_v31  ;;  %v1499_v43 = vld [vmem:[%s3253_s4 + $0xe0] sm:$0xff] }
 0x142   : > { %1641 = vst.msk [vmem:[%s3253_s4 + $0x40] sm:$0xff] %vm315_vm12, %v1608_v2  ;;  %1640 = vst.msk [vmem:[%s3253_s4 + $0x38] sm:$0xff] %vm315_vm12, %v1607_v52  ;;  %v1502_v52 = vld [vmem:[%s3253_s4 + $0xf8] sm:$0xff] }
 0x143   : > { %v1533_v53 = vpop.xlane.xlu0 %1532 }
 0x144   : > { %v1536_v12 = vpop.xlane.xlu1 %1535  ;;  %v1609_v48 = vadd.f32 %v1533_v53, %v1480_v40 }
 0x145   : > { %v1610_v17 = vadd.f32 %v1536_v12, %v1481_v24  ;;  %v1501_v12 = vld [vmem:[%s3253_s4 + $0xf0] sm:$0xff] }
 0x146   : > { %1642 = vst.msk [vmem:[%s3253_s4 + $0x48] sm:$0xff] %vm315_vm12, %v1609_v48 }
 0x147   : > { %1643 = vst.msk [vmem:[%s3253_s4 + $0x50] sm:$0xff] %vm315_vm12, %v1610_v17 }
 0x148   : > { %v1542_v19 = vpop.xlane.xlu1 %1541  ;;  %v1539_v14 = vpop.xlane.xlu0 %1538 }
 0x149   : > { %v1612_v58 = vadd.f32 %v1542_v19, %v1483_v18  ;;  %v1611_v8 = vadd.f32 %v1539_v14, %v1482_v33 }
 0x14b   : > { %1645 = vst.msk [vmem:[%s3253_s4 + $0x60] sm:$0xff] %vm315_vm12, %v1612_v58  ;;  %1644 = vst.msk [vmem:[%s3253_s4 + $0x58] sm:$0xff] %vm315_vm12, %v1611_v8 }
 0x14c   : > { %v1545_v21 = vpop.xlane.xlu0 %1544 }
 0x14d   : > { %v1548_v7 = vpop.xlane.xlu1 %1547  ;;  %v1613_v15 = vadd.f32 %v1545_v21, %v1484_v23 }
 0x14e   : > { %v1614_v47 = vadd.f32 %v1548_v7, %v1485_v5 }
 0x14f   : > { %1646 = vst.msk [vmem:[%s3253_s4 + $0x68] sm:$0xff] %vm315_vm12, %v1613_v15 }
 0x150   : > { %1647 = vst.msk [vmem:[%s3253_s4 + $0x70] sm:$0xff] %vm315_vm12, %v1614_v47  ;;  %v1551_v51 = vpop.xlane.xlu0 %1550 }
 0x151   : > { %v1554_v6 = vpop.xlane.xlu1 %1553  ;;  %v1615_v32 = vadd.f32 %v1551_v51, %v1486_v13 }
 0x152   : > { %v1616_v41 = vadd.f32 %v1554_v6, %v1487_v42 }
 0x153   : > { %1648 = vst.msk [vmem:[%s3253_s4 + $0x78] sm:$0xff] %vm315_vm12, %v1615_v32 }
 0x154   : > { %1649 = vst.msk [vmem:[%s3253_s4 + $0x80] sm:$0xff] %vm315_vm12, %v1616_v41  ;;  %v1557_v62 = vpop.xlane.xlu0 %1556 }
 0x155   : > { %v1560_v50 = vpop.xlane.xlu1 %1559  ;;  %v1617_v54 = vadd.f32 %v1557_v62, %v1488_v37 }
 0x156   : > { %v1618_v34 = vadd.f32 %v1560_v50, %v1489_v3 }
 0x157   : > { %1650 = vst.msk [vmem:[%s3253_s4 + $0x88] sm:$0xff] %vm315_vm12, %v1617_v54 }
 0x158   : > { %1651 = vst.msk [vmem:[%s3253_s4 + $0x90] sm:$0xff] %vm315_vm12, %v1618_v34 }
 0x15a   : > { %v1566_v27 = vpop.xlane.xlu1 %1565  ;;  %v1563_v49 = vpop.xlane.xlu0 %1562 }
 0x15b   : > { %v1620_v0 = vadd.f32 %v1566_v27, %v1491_v36  ;;  %v1619_v57 = vadd.f32 %v1563_v49, %v1490_v38 }
 0x15d   : > { %1653 = vst.msk [vmem:[%s3253_s4 + $0xa0] sm:$0xff] %vm315_vm12, %v1620_v0  ;;  %1652 = vst.msk [vmem:[%s3253_s4 + $0x98] sm:$0xff] %vm315_vm12, %v1619_v57 }
 0x161   : > { %v1572_v10 = vpop.xlane.xlu1 %1571 }
 0x162   : > { %v1622_v28 = vadd.f32 %v1572_v10, %v1493_v56 }
 0x163   : > { %v1569_v46 = vpop.xlane.xlu0 %1568 }
 0x164   : > { %1655 = vst.msk [vmem:[%s3253_s4 + $0xb0] sm:$0xff] %vm315_vm12, %v1622_v28  ;;  %v1621_v44 = vadd.f32 %v1569_v46, %v1492_v30 }
 0x166   : > { %1654 = vst.msk [vmem:[%s3253_s4 + $0xa8] sm:$0xff] %vm315_vm12, %v1621_v44 }
 0x16d   : > { %v1578_v20 = vpop.xlane.xlu1 %1577 }
 0x16e   : > { %v1624_v39 = vadd.f32 %v1578_v20, %v1495_v25 }
 0x16f   : > { %v1575_v61 = vpop.xlane.xlu0 %1574 }
 0x170   : > { %1657 = vst.msk [vmem:[%s3253_s4 + $0xc0] sm:$0xff] %vm315_vm12, %v1624_v39  ;;  %v1623_v63 = vadd.f32 %v1575_v61, %v1494_v45 }
 0x172   : > { %1656 = vst.msk [vmem:[%s3253_s4 + $0xb8] sm:$0xff] %vm315_vm12, %v1623_v63 }
 0x17b   : > { %v1581_v59 = vpop.xlane.xlu0 %1580 }
 0x17c   : > { %v1625_v16 = vadd.f32 %v1581_v59, %v1496_v1 }
 0x17e   : > { %1658 = vst.msk [vmem:[%s3253_s4 + $0xc8] sm:$0xff] %vm315_vm12, %v1625_v16 }
 0x17f   : > { %v1587_v11 = vpop.xlane.xlu0 %1586 }
 0x180   : > { %v1627_v60 = vadd.f32 %v1587_v11, %v1498_v35 }
 0x181   : > { %v1584_v26 = vpop.xlane.xlu1 %1583 }
 0x182   : > { %v1626_v55 = vadd.f32 %v1584_v26, %v1497_v9  ;;  %1660 = vst.msk [vmem:[%s3253_s4 + $0xd8] sm:$0xff] %vm315_vm12, %v1627_v60 }
 0x184   : > { %1659 = vst.msk [vmem:[%s3253_s4 + $0xd0] sm:$0xff] %vm315_vm12, %v1626_v55 }
 0x187   : > { %v1593_v4 = vpop.xlane.xlu0 %1592 }
 0x188   : > { %v1629_v31 = vadd.f32 %v1593_v4, %v1500_v29 }
 0x18a   : > { %1662 = vst.msk [vmem:[%s3253_s4 + $0xe8] sm:$0xff] %vm315_vm12, %v1629_v31 }
 0x18f   : > { %v1590_v22 = vpop.xlane.xlu1 %1589 }
 0x190   : > { %v1628_v2 = vadd.f32 %v1590_v22, %v1499_v43 }
 0x192   : > { %1661 = vst.msk [vmem:[%s3253_s4 + $0xe0] sm:$0xff] %vm315_vm12, %v1628_v2  ;;  %v1599_v24 = vpop.xlane.xlu0 %1598 }
 0x193   : > { %v1631_v40 = vadd.f32 %v1599_v24, %v1502_v52 }
 0x195   : > { %1664 = vst.msk [vmem:[%s3253_s4 + $0xf8] sm:$0xff] %vm315_vm12, %v1631_v40 }
 0x199   : > { %v1596_v53 = vpop.xlane.xlu1 %1595 }
 0x19a   : > { %v1630_v17 = vadd.f32 %v1596_v53, %v1501_v12 }
 0x19c   : > { %1663 = vst.msk [vmem:[%s3253_s4 + $0xf0] sm:$0xff] %vm315_vm12, %v1630_v17 }
 0x19d PF: > { %s13_s14 = sadd.s32 1, %s1992_s14   ;;  %s3653_s12 = smov %s1988_s13 }
 0x19e   : > { %p10_p6 = scmp.ge.s32.totalorder %s13_s14, 4   ;;  %s3654_s13 = smov %s3656_s15 }
 0x1a0   :  { %12 = sbr.rel (!%p10_p6) target bundleno = 2 (0x2), region = 72 }

</bundles_post_ra>
